<compile_context>
chip_gen: v7x
topology: tpu7x:2x2x1
jax: 0.10.0
libtpu: 0.0.40
codegen_flags: <defaults>
</compile_context>

<pallas_src>
import functools

import jax
import jax.numpy as jnp
from jax.experimental import pallas as pl
from jax.experimental.pallas import tpu as pltpu

# ---------------- model dims ----------------
HIDDEN = 32768        # fixed by nn.Linear(32768, n_classes)
N_CLASSES = 3         # sentiment: neg / neu / pos
DROPOUT_P = 0.1

B_PAD = 8             # sublane padding for batch
C_PAD = 8             # sublane padding for classes (weight stored transposed [C_PAD, HIDDEN])
TK = 8192             # K-tile along the hidden (reduction) axis -> 4 grid steps

_DROP_THRESHOLD_U32 = int(DROPOUT_P * (1 << 32))   # P(bits < thr) = p  -> drop
_KEEP_SCALE = 1.0 / (1.0 - DROPOUT_P)


def _head_kernel(seed_ref, x_ref, wt_ref, b_ref, o_ref, *, apply_dropout):
    """One K-chunk of: logits = dropout(pooled, p) @ W + b.

    seed_ref : SMEM scalar prefetch, int32[1]
    x_ref    : VMEM (B_PAD, TK)   bf16 slice of pooled_output
    wt_ref   : VMEM (C_PAD, TK)   bf16 slice of W^T (classes on sublanes, hidden on lanes)
    b_ref    : VMEM (1, C_PAD)    f32 bias
    o_ref    : VMEM (B_PAD, C_PAD) f32 output, resident across the K grid axis (accumulator)
    """
    k = pl.program_id(0)

    @pl.when(k == 0)
    def _():
        o_ref[...] = jnp.zeros_like(o_ref)

    x = x_ref[...]

    if apply_dropout:
        # --- stateless per-element random bits: murmur3 finalizer of (global index ^ seed)
        shape = x_ref.shape                                   # (B_PAD, TK)
        row = jax.lax.broadcasted_iota(jnp.int32, shape, 0)
        col = jax.lax.broadcasted_iota(jnp.int32, shape, 1)
        idx = row * HIDDEN + col + k * TK + seed_ref[0]       # unique int32 per element
        h = idx.astype(jnp.uint32)
        h = h ^ (h >> 16)
        h = h * jnp.uint32(0x85EBCA6B)
        h = h ^ (h >> 13)
        h = h * jnp.uint32(0xC2B2AE35)
        h = h ^ (h >> 16)
        keep = h >= jnp.uint32(_DROP_THRESHOLD_U32)           # P(keep) = 1 - p
        x = jnp.where(keep, x, jnp.zeros_like(x))             # scale folded into epilogue

    # --- MXU accumulate: contract the hidden axis of x[8,TK] against Wt[8,TK] -> [8,8]
    o_ref[...] += jax.lax.dot_general(
        x, wt_ref[...],
        dimension_numbers=(((1,), (1,)), ((), ())),
        preferred_element_type=jnp.float32)

    @pl.when(k == pl.num_programs(0) - 1)
    def _():
        scale = jnp.float32(_KEEP_SCALE if apply_dropout else 1.0)
        o_ref[...] = o_ref[...] * scale + b_ref[...]


def classifier_head(pooled, wt_packed, b_packed, seed, *, training=True,
                    n_classes=N_CLASSES):
    """pooled: [B, HIDDEN], wt_packed: [C_PAD, HIDDEN] bf16, b_packed: [1, C_PAD] f32."""
    b, h = pooled.shape
    assert h == HIDDEN
    assert wt_packed.shape == (C_PAD, HIDDEN)

    # Only the activation is padded/cast per call (cheap); the weight was packed at init.
    x_p = jnp.zeros((B_PAD, HIDDEN), jnp.bfloat16).at[:b].set(pooled.astype(jnp.bfloat16))
    seed_arr = jnp.asarray([seed], jnp.int32)

    n_k = HIDDEN // TK
    kernel = functools.partial(_head_kernel, apply_dropout=training)

    out_p = pl.pallas_call(
        kernel,
        out_shape=jax.ShapeDtypeStruct((B_PAD, C_PAD), jnp.float32),
        grid_spec=pltpu.PrefetchScalarGridSpec(
            num_scalar_prefetch=1,
            grid=(n_k,),
            in_specs=[
                pl.BlockSpec((B_PAD, TK), lambda k, seed: (0, k)),
                pl.BlockSpec((C_PAD, TK), lambda k, seed: (0, k)),
                pl.BlockSpec((1, C_PAD), lambda k, seed: (0, 0)),
            ],
            out_specs=pl.BlockSpec((B_PAD, C_PAD), lambda k, seed: (0, 0)),
        ),
        compiler_params=pltpu.CompilerParams(
            dimension_semantics=("arbitrary",),   # K is a reduction axis
        ),
    )(seed_arr, x_p, wt_packed, b_packed)

    return out_p[:b, :n_classes]


def prepare_head_params(out_w, out_b):
    """One-time packing (init-time, NOT in the forward path):
    W [HIDDEN, C] -> W^T padded to [C_PAD, HIDDEN] bf16; bias -> [1, C_PAD] f32."""
    c = out_w.shape[1]
    wt = jnp.zeros((C_PAD, HIDDEN), jnp.bfloat16).at[:c].set(out_w.T.astype(jnp.bfloat16))
    bp = jnp.zeros((1, C_PAD), jnp.float32).at[0, :c].set(out_b.astype(jnp.float32))
    return wt, bp


def sentiment_classifier_forward(input_ids, attention_mask, params, seed=0, training=True):
    """Forward pass of SentimentClassifier.

    input_ids      : int32 [B, S]
    attention_mask : int32 [B, S] (1 = token, 0 = pad)
    """
    # TODO(synk): the HuggingFace backbone has no Pallas equivalent; stand-in pooler below is
    # a deterministic embedding lookup + masked mean + tanh producing the 32768-dim pooled_output.
    emb = params["embedding"][input_ids]                       # [B, S, HIDDEN]
    mask = attention_mask[..., None].astype(jnp.float32)       # [B, S, 1]
    pooled = (emb * mask).sum(axis=1) / jnp.maximum(mask.sum(axis=1), 1.0)
    pooled = jnp.tanh(pooled)                                  # [B, HIDDEN]

    # dropout + nn.Linear(32768, n_classes) — the Pallas hot path
    return classifier_head(pooled, params["out_wt_packed"], params["out_b_packed"],
                           seed, training=training)


def init_params(key, vocab_size=64, n_classes=N_CLASSES):
    k_emb, k_w, k_b = jax.random.split(key, 3)
    out_w = jax.random.normal(k_w, (HIDDEN, n_classes), jnp.float32) * (1.0 / jnp.sqrt(HIDDEN))
    out_b = jax.random.normal(k_b, (n_classes,), jnp.float32) * 0.01
    out_wt_packed, out_b_packed = prepare_head_params(out_w, out_b)
    return {
        "embedding": jax.random.normal(k_emb, (vocab_size, HIDDEN), jnp.float32) * 0.02,
        "out_wt_packed": out_wt_packed,   # [C_PAD, HIDDEN] bf16, packed once at init
        "out_b_packed": out_b_packed,     # [1, C_PAD] f32
    }


if __name__ == "__main__":
    key = jax.random.PRNGKey(0)
    k_params, k_ids = jax.random.split(key)

    B, S, VOCAB = 2, 8, 64
    params = init_params(k_params, vocab_size=VOCAB, n_classes=N_CLASSES)
    input_ids = jax.random.randint(k_ids, (B, S), 0, VOCAB, dtype=jnp.int32)
    attention_mask = jnp.ones((B, S), jnp.int32).at[1, 6:].set(0)  # pad tail of sample 1

    logits = sentiment_classifier_forward(input_ids, attention_mask, params,
                                          seed=0, training=True)
    jax.block_until_ready(logits)
    assert logits.shape == (B, N_CLASSES) and logits.dtype == jnp.float32
    assert bool(jnp.all(jnp.isfinite(logits)))
    print("KERNEL_OK")
</pallas_src>

<mosaic_0001>
module attributes {stable_mosaic.version = 11 : i64} {
  func.func @_head_kernel(%arg0: i32, %arg1: memref<1xi32, #tpu.memory_space<smem>>, %arg2: memref<8x8192xbf16, #tpu.memory_space<vmem>>, %arg3: memref<8x8192xbf16, #tpu.memory_space<vmem>>, %arg4: memref<1x8xf32, #tpu.memory_space<vmem>>, %arg5: memref<8x8xf32, #tpu.memory_space<vmem>>) attributes {dimension_semantics = [#tpu.dimension_semantics<arbitrary>], iteration_bounds = array<i64: 4>, scalar_prefetch = 1 : i64, scratch_operands = 0 : i64, tpu.core_type = #tpu.core_type<tc>, window_params = [{transform_indices = @transform_0, window_bounds = array<i64: 8, 8192>}, {transform_indices = @transform_1, window_bounds = array<i64: 8, 8192>}, {pipeline_mode = #tpu.pipeline_mode<synchronous>, transform_indices = @transform_2, window_bounds = array<i64: 1, 8>}, {pipeline_mode = #tpu.pipeline_mode<synchronous>, transform_indices = @transform_3, window_bounds = array<i64: 8, 8>}]} {
    %c0_i32 = arith.constant 0 : i32
    %0 = arith.cmpi eq, %arg0, %c0_i32 : i32
    %1 = arith.extui %0 : i1 to i32
    %c0_i32_0 = arith.constant 0 : i32
    %2 = arith.cmpi ne, %1, %c0_i32_0 : i32
    scf.if %2 {
      %cst_12 = arith.constant 0.000000e+00 : f32
      %40 = vector.broadcast %cst_12 : f32 to vector<8x8xf32>
      %c0_13 = arith.constant 0 : index
      %c0_14 = arith.constant 0 : index
      %41 = vector.load %arg5[%c0_13, %c0_14] : memref<8x8xf32, #tpu.memory_space<vmem>>, vector<8x8xf32>
      tpu.vector_store %arg5[%c0_13, %c0_14], %40 {strides = array<i32>} : memref<8x8xf32, #tpu.memory_space<vmem>>, vector<8x8xf32>,
    } else {
    }
    %c0 = arith.constant 0 : index
    %c0_1 = arith.constant 0 : index
    %3 = vector.load %arg2[%c0, %c0_1] : memref<8x8192xbf16, #tpu.memory_space<vmem>>, vector<8x8192xbf16>
    %4 = tpu.iota {dimensions = array<i32: 0>} : vector<8x8192xi32>
    %5 = tpu.iota {dimensions = array<i32: 1>} : vector<8x8192xi32>
    %c32768_i32 = arith.constant 32768 : i32
    %6 = vector.broadcast %c32768_i32 : i32 to vector<8x8192xi32>
    %7 = arith.muli %4, %6 : vector<8x8192xi32>
    %8 = arith.addi %7, %5 : vector<8x8192xi32>
    %c8192_i32 = arith.constant 8192 : i32
    %9 = arith.muli %arg0, %c8192_i32 : i32
    %10 = vector.broadcast %9 : i32 to vector<8x8192xi32>
    %11 = arith.addi %8, %10 : vector<8x8192xi32>
    %c0_2 = arith.constant 0 : index
    %12 = memref.load %arg1[%c0_2] : memref<1xi32, #tpu.memory_space<smem>>
    %13 = vector.broadcast %12 : i32 to vector<8x8192xi32>
    %14 = arith.addi %11, %13 : vector<8x8192xi32>
    %c16_i32 = arith.constant 16 : i32
    %15 = vector.broadcast %c16_i32 : i32 to vector<8x8192xi32>
    %16 = arith.shrui %14, %15 : vector<8x8192xi32>
    %17 = arith.xori %14, %16 : vector<8x8192xi32>
    %c-2048144789_i32 = arith.constant -2048144789 : i32
    %18 = vector.broadcast %c-2048144789_i32 : i32 to vector<8x8192xi32>
    %19 = arith.muli %17, %18 : vector<8x8192xi32>
    %c13_i32 = arith.constant 13 : i32
    %20 = vector.broadcast %c13_i32 : i32 to vector<8x8192xi32>
    %21 = arith.shrui %19, %20 : vector<8x8192xi32>
    %22 = arith.xori %19, %21 : vector<8x8192xi32>
    %c-1028477387_i32 = arith.constant -1028477387 : i32
    %23 = vector.broadcast %c-1028477387_i32 : i32 to vector<8x8192xi32>
    %24 = arith.muli %22, %23 : vector<8x8192xi32>
    %c16_i32_3 = arith.constant 16 : i32
    %25 = vector.broadcast %c16_i32_3 : i32 to vector<8x8192xi32>
    %26 = arith.shrui %24, %25 : vector<8x8192xi32>
    %27 = arith.xori %24, %26 : vector<8x8192xi32>
    %c429496729_i32 = arith.constant 429496729 : i32
    %28 = vector.broadcast %c429496729_i32 : i32 to vector<8x8192xi32>
    %29 = arith.cmpi uge, %27, %28 : vector<8x8192xi32>
    %cst = arith.constant 0.000000e+00 : bf16
    %30 = vector.broadcast %cst : bf16 to vector<8x8192xbf16>
    %31 = arith.select %29, %3, %30 : vector<8x8192xi1>, vector<8x8192xbf16>
    %c0_4 = arith.constant 0 : index
    %c0_5 = arith.constant 0 : index
    %32 = vector.load %arg5[%c0_4, %c0_5] : memref<8x8xf32, #tpu.memory_space<vmem>>, vector<8x8xf32>
    %c0_6 = arith.constant 0 : index
    %c0_7 = arith.constant 0 : index
    %33 = vector.load %arg3[%c0_6, %c0_7] : memref<8x8192xbf16, #tpu.memory_space<vmem>>, vector<8x8192xbf16>
    %cst_8 = arith.constant dense<0.000000e+00> : vector<8x8xf32>
    %34 = tpu.matmul %31, %33, %cst_8 {dimension_numbers = #tpu.dot_dimension_numbers<[1], [1], [0], [0], [0, 0, 1, 0], [], []>} : vector<8x8192xbf16>, vector<8x8192xbf16>, vector<8x8xf32> -> vector<8x8xf32>
    %35 = arith.addf %32, %34 : vector<8x8xf32>
    %c0_9 = arith.constant 0 : index
    %c0_10 = arith.constant 0 : index
    %36 = vector.load %arg5[%c0_9, %c0_10] : memref<8x8xf32, #tpu.memory_space<vmem>>, vector<8x8xf32>
    tpu.vector_store %arg5[%c0_9, %c0_10], %35 {strides = array<i32>} : memref<8x8xf32, #tpu.memory_space<vmem>>, vector<8x8xf32>,
    %c3_i32 = arith.constant 3 : i32
    %37 = arith.cmpi eq, %arg0, %c3_i32 : i32
    %38 = arith.extui %37 : i1 to i32
    %c0_i32_11 = arith.constant 0 : i32
    %39 = arith.cmpi ne, %38, %c0_i32_11 : i32
    scf.if %39 {
      %c0_12 = arith.constant 0 : index
      %c0_13 = arith.constant 0 : index
      %40 = vector.load %arg5[%c0_12, %c0_13] : memref<8x8xf32, #tpu.memory_space<vmem>>, vector<8x8xf32>
      %cst_14 = arith.constant 1.11111116 : f32
      %41 = vector.broadcast %cst_14 : f32 to vector<8x8xf32>
      %42 = arith.mulf %40, %41 : vector<8x8xf32>
      %c0_15 = arith.constant 0 : index
      %c0_16 = arith.constant 0 : index
      %43 = vector.load %arg4[%c0_15, %c0_16] : memref<1x8xf32, #tpu.memory_space<vmem>>, vector<1x8xf32>
      %44 = vector.broadcast %43 : vector<1x8xf32> to vector<8x8xf32>
      %45 = arith.addf %42, %44 : vector<8x8xf32>
      %c0_17 = arith.constant 0 : index
      %c0_18 = arith.constant 0 : index
      %46 = vector.load %arg5[%c0_17, %c0_18] : memref<8x8xf32, #tpu.memory_space<vmem>>, vector<8x8xf32>
      tpu.vector_store %arg5[%c0_17, %c0_18], %45 {strides = array<i32>} : memref<8x8xf32, #tpu.memory_space<vmem>>, vector<8x8xf32>,
    } else {
    }
    return
  }
  func.func @transform_0(%arg0: i32, %arg1: memref<1xi32, #tpu.memory_space<smem>>) -> (i32, i32) {
    %c0_i32 = arith.constant 0 : i32
    %c0_i32_0 = arith.constant 0 : i32
    return %c0_i32, %arg0 : i32, i32
  }
  func.func @transform_1(%arg0: i32, %arg1: memref<1xi32, #tpu.memory_space<smem>>) -> (i32, i32) {
    %c0_i32 = arith.constant 0 : i32
    %c0_i32_0 = arith.constant 0 : i32
    return %c0_i32, %arg0 : i32, i32
  }
  func.func @transform_2(%arg0: i32, %arg1: memref<1xi32, #tpu.memory_space<smem>>) -> (i32, i32) {
    %c0_i32 = arith.constant 0 : i32
    %c0_i32_0 = arith.constant 0 : i32
    %c0_i32_1 = arith.constant 0 : i32
    return %c0_i32, %c0_i32_0 : i32, i32
  }
  func.func @transform_3(%arg0: i32, %arg1: memref<1xi32, #tpu.memory_space<smem>>) -> (i32, i32) {
    %c0_i32 = arith.constant 0 : i32
    %c0_i32_0 = arith.constant 0 : i32
    %c0_i32_1 = arith.constant 0 : i32
    return %c0_i32, %c0_i32_0 : i32, i32
  }
}

</mosaic_0001>

<bundles_post_ra>
// kernel: tpu_custom_call.1
= control target key start
LH: loop header
LB: loop body
LE: loop exit
PB: predicated region body
PF: predicated region fallthrough
CT: control target
= control target key end

     0   :  { %s4226_s0 = inlined_call_operand.<no memory space> [shape: s32[1], index: 0, kind: input, shape index: {}]   ;;  %s4227_s1 = inlined_call_operand.hbm [shape: bf16[8,32768], index: 1, kind: input, shape index: {}]   ;;  %s4228_s2 = inlined_call_operand.hbm [shape: bf16[8,32768], index: 2, kind: input, shape index: {}]   ;;  %s4229_s3 = inlined_call_operand.vmem [shape: f32[1,8], index: 3, kind: input, shape index: {}]   ;;  %s4230_s4 = inlined_call_operand.hbm [shape: f32[8,8], index: 4, kind: output, shape index: {}]  }
   0x1   :  { %9 = sst [smem:[#allocation3]] %s4226_s0 }
   0x2   :  { %10 = vsyncpa [#allocation5], 0 }
   0x3   :  { %12 = vsyncpa [#allocation5 + $0x1], 0 }
   0x4   :  { %13 = vsyncpa [#allocation8], 0 }
   0x5   :  { %15 = vsyncpa [#allocation8 + $0x1], 0 }
   0x6   :  { %16 = vsyncpa [#allocation6], 0  ;;  %s3447_s17 = smov 0   ;;  %s3449_s18 = smov 0  }
   0x7   :  { %s3451_s19 = smov 0   ;;  %s3453_s20 = smov 0  }
   0x8 LB: > { %s3466_s0 = sadd.s32 4294967295, %s3413_s20   ;;  %s3469_s21 = sadd.s32 1, %s3413_s20   ;;  %s3413_s20 = sphi %s3453_s20, %s4242_s20   ;;  %s3409_s19 = sphi %s3451_s19, %s4241_s19   ;;  %s3405_s18 = sphi %s3449_s18, %s4240_s18   ;;  %s3401_s17 = sphi %s3447_s17, %s4239_s17  }
   0x9   : > { %s26_s22 = ssub.s32 %s3413_s20, %s3469_s21  ;;  %s29_s23 = sadd.s32 1, %s3409_s19 }
   0xa   : > { %p27_p0 = scmp.eq.s32.totalorder %s26_s22, 0  ;;  %p36_p1 = scmp.ne.s32.totalorder %s3409_s19, %s3405_s18 }
   0xb   : > { %p37_p2 = scmp.eq.s32.totalorder %s3413_s20, 0  ;;  %p42_p3 = scmp.ne.s32.totalorder %s3405_s18, %s3401_s17 }
   0xc   : > { %s3479_s24 = scalar_select %p27_p0, %s3409_s19, %s29_s23  }
   0xd   : > { %p38_p4 = por %p37_p2, %p36_p1  ;;  %p43_p5 = scmp.eq.s32.totalorder %s3466_s0, 0 }
   0xe   : > { %p3184_p6 = scmp.lt.s32.totalorder %s3413_s20, 4  ;;  %s3488_s26 = sand.u32 1, %s3409_s19  }
   0xf   : > { %p3483_p7 = por %p43_p5, %p42_p3  ;;  %s3022_s27 = sshll.u32 %s3488_s26, 8 }
  0x10   : > { %s3167_s28 = sshll.u32 %s3413_s20, 12  ;;  %s141_s6 = scalar_lea.vmem [#allocation4], %s3022_s27 }
  0x11   : > { %s4232_s25 = scalar_select %p3483_p7, 1, 0 }
  0x12   : > { %s3497_s5 = scalar_lea.hbm %s4227_s1, %s3167_s28  ;;  %s149_s7 = sshll.u32 %s141_s6, 4  ;;  %s3501_s7 = int_to_ptr.vmem [resolvable:$true] %s149_s7 }
  0x13   : > { %p3503_p8 = pnand %p3184_p6, %p38_p4  ;;  %s138_s9 = scalar_lea.sflag [#allocation5], %s3488_s26 }
  0x14   : > { %s3285_s10 = scalar_lea.hbm %s3497_s5, 4096  ;;  %s3290_s13 = scalar_lea.hbm %s4227_s1, 16384 }
  0x15   : > { %p3286_p11 = scmp.ne.s32.totalorder %s3497_s5, %s3285_s10  ;;  %p3287_p12 = pneg %p3503_p8 }
  0x16   : > { %p3291_p1 = scmp.lt.u32.totalorder %s3497_s5, %s4227_s1  ;;  %p3292_p2 = scmp.lt.u32.totalorder %s3290_s13, %s3285_s10 }
  0x17   : > { %p3288_p13 = pnand %p3287_p12, %p3286_p11  ;;  %p3294_p4 = scmp.lt.u32.totalorder %s3285_s10, %s3497_s5 }
  0x18   : > { %p3293_p3 = por %p3292_p2, %p3291_p1 }
  0x19   : > { %p3289_p0 = pneg %p3288_p13 }
  0x1a   : > { %p3295_p5 = por %p3294_p4, %p3293_p3 }
  0x1c   : > { %p3296_p6 = pnand %p3295_p5, %p3289_p0 }
  0x1e   : > { %3299 = shalt.err (!%p3296_p6)
}
  0x1f   : > { %s3300_s16 = scalar_lea.vmem %s3501_s7, 4096  ;;  %s3415_s17 = smov [#allocation4]  }
  0x20   : > { %p3301_p11 = scmp.ne.s32.totalorder %s3501_s7, %s3300_s16  ;;  %s3305_s22 = sshll.u32 %s3415_s17, 4  ;;  %s3306_s22 = int_to_ptr.vmem [resolvable:$false] %s3305_s22 }
  0x21   : > { %s3307_s23 = scalar_lea.vmem %s3306_s22, 8192  ;;  %p3308_p10 = scmp.lt.s32.totalorder %s3501_s7, %s3306_s22 }
  0x22   : > { %p3303_p13 = pnand %p3301_p11, %p3287_p12  ;;  %p3309_p1 = scmp.lt.s32.totalorder %s3307_s23, %s3300_s16 }
  0x24   : > { %p3304_p9 = pneg %p3303_p13  ;;  %p3310_p2 = por %p3309_p1, %p3308_p10 }
  0x26   : > { %p3311_p3 = pnand %p3310_p2, %p3304_p9 }
  0x28   : > { %3314 = shalt.err (!%p3311_p3)
}
  0x29   : > { %3180 = dma.hbm_to_vmem [thread:$0]  (!%p3503_p8), %s3497_s5, 4096, %s3501_s7, %s138_s9  }
  0x2a   : > { %p4234_p0 = scmp.lt.s32.totalorder %s3413_s20, 5  ;;  %p4235_p4 = scmp.ge.s32.totalorder %s3413_s20, 1 }
  0x2b   : > { %s3548_s10 = scalar_lea.hbm %s4228_s2, %s3167_s28  ;;  %s160_s11 = scalar_lea.vmem [#allocation7], %s3022_s27 }
  0x2c   : > { %p3539_p5 = pnand %p4235_p4, %p4234_p0  ;;  %s168_s12 = sshll.u32 %s160_s11, 4  ;;  %s169_s12 = int_to_ptr.vmem [resolvable:$true] %s168_s12 }
  0x2d   : > { %s157_s5 = scalar_lea.sflag [#allocation8], %s3488_s26  ;;  %s3315_s7 = scalar_lea.hbm %s3548_s10, 4096 }
  0x2e   : > { %s4236_s29 = scalar_select %p3539_p5, 1, 0 }
  0x2f   : > { %p3316_p9 = scmp.ne.s32.totalorder %s3548_s10, %s3315_s7  ;;  %s3320_s28 = scalar_lea.hbm %s4228_s2, 16384 }
  0x30   : > { %p3321_p11 = scmp.lt.u32.totalorder %s3548_s10, %s4228_s2  ;;  %p3322_p13 = scmp.lt.u32.totalorder %s3320_s28, %s3315_s7 }
  0x31   : > { %p3318_p10 = pnand %p3316_p9, %p3287_p12  ;;  %p3324_p2 = scmp.lt.u32.totalorder %s3315_s7, %s3548_s10 }
  0x32   : > { %p3323_p1 = por %p3322_p13, %p3321_p11 }
  0x33   : > { %p3319_p6 = pneg %p3318_p10 }
  0x34   : > { %p3325_p3 = por %p3324_p2, %p3323_p1 }
  0x36   : > { %p3326_p0 = pnand %p3325_p3, %p3319_p6 }
  0x38   : > { %3329 = shalt.err (!%p3326_p0)
}
  0x39   : > { %s3330_s26 = scalar_lea.vmem %s169_s12, 4096  ;;  %s3416_s27 = smov [#allocation7]  }
  0x3a   : > { %p3331_p4 = scmp.ne.s32.totalorder %s169_s12, %s3330_s26  ;;  %s3335_s15 = sshll.u32 %s3416_s27, 4  ;;  %s3336_s15 = int_to_ptr.vmem [resolvable:$false] %s3335_s15 }
  0x3b   : > { %s3337_s16 = scalar_lea.vmem %s3336_s15, 8192  ;;  %p3338_p7 = scmp.lt.s32.totalorder %s169_s12, %s3336_s15 }
  0x3c   : > { %p3333_p9 = pnand %p3331_p4, %p3287_p12  ;;  %p3339_p5 = scmp.lt.s32.totalorder %s3337_s16, %s3330_s26 }
  0x3e   : > { %p3334_p10 = pneg %p3333_p9  ;;  %p3340_p11 = por %p3339_p5, %p3338_p7 }
  0x40   : > { %p3341_p13 = pnand %p3340_p11, %p3334_p10 }
  0x42   : > { %3344 = shalt.err (!%p3341_p13)
}
  0x43   : > { %3183 = dma.hbm_to_vmem [thread:$0]  (!%p3503_p8), %s3548_s10, 4096, %s169_s12, %s157_s5  }
  0x44   : > { %p4237_p6 = scmp.ne.s32.totalorder %s4236_s29, 0 }
  0x45   : > { %s179_s17 = sand.u32 (!%p4237_p6), 1, %s3405_s18   ;;  %p4238_p12 = scmp.ne.s32.totalorder (!%p4237_p6), %s4232_s25, 0 }
  0x46   : > { %177 = sbr.rel (%p4237_p6) target bundleno = 600 (0x258), region = 32  ;;  %s3029_s22 = sshll.u32 (!%p4237_p6), %s179_s17, 8 }
  0x47   : > { %s180_s23 = scalar_lea.sflag (!%p4237_p6), [#allocation5], %s179_s17  ;;  %s3575_s30 = scalar_lea.vmem (!%p4237_p6), [#allocation4], %s3029_s22 }
  0x4d   : > { %3388 = dma.done.wait (%p4238_p12), %s180_s23, 4096  }
  0x4e   : > { %3390 = vsyncadd (%p4238_p12), %s180_s23, 4294963200  ;;  %s189_s6 = scalar_lea.sflag [#allocation8], %s179_s17  ;;  %s3581_s8 = scalar_lea.vmem [#allocation7], %s3029_s22 }
  0x4f   : > { %3392 = dma.done.wait (%p4238_p12), %s189_s6, 4096  }
  0x50   : > { %3394 = vsyncadd (%p4238_p12), %s189_s6, 4294963200  ;;  %p3031_p7 = scmp.ne.s32.totalorder %s3466_s0, 0 }
  0x51   : > { %vm222_vm0 = vcmask (!%p3031_p7), 64512   ;;  %v3417_v0 = vmov (!%p3031_p7), 0.0  }
  0x52   : > { %221 = sbr.rel (%p3031_p7) target bundleno = 89 (0x59), region = 44  ;;  %223 = vst.msk [vmem:[#allocation9] sm:$0xff] (!%p3031_p7), %vm222_vm0, %v3417_v0 }
  0x59 PF: > { %v1161_v1 = vld [vmem:[%s3581_s8] sm:$0xff]  ;;  %v1162_v2 = vld [vmem:[%s3581_s8 + $0x8] sm:$0xff]  ;;  %v256_v3 = vlaneseq  ;;  %s3032_s29 = sshll.u32 %s3466_s0, 13  ;;  %s454_s10 = sld [smem:[#allocation3]]  ;;  %v3592_v8 = vld [vmem:[%s3581_s8 + $0x10] sm:$0xff] }
  0x5a   : > { %v3098_v4 = vcombine.high %v1161_v1, %v1161_v1  ;;  %v3097_v5 = vcombine.low %v1161_v1, %v1161_v1  ;;  %v3100_v6 = vcombine.high %v1162_v2, %v1162_v2  ;;  %v3099_v7 = vcombine.low %v1162_v2, %v1162_v2  ;;  %v3595_v9 = vld [vmem:[%s3581_s8 + $0x18] sm:$0xff]  ;;  %v3646_v57 = vld [vmem:[%s3581_s8 + $0x20] sm:$0xff]  ;;  %v3649_v62 = vld [vmem:[%s3581_s8 + $0x28] sm:$0xff]  ;;  %p3161_p8 = scmp.ne.s32.totalorder %s3466_s0, 3 }
  0x5b   : > { %v257_v10 = vshrl.u32 %v256_v3, 7  ;;  %v3597_v11 = vand.u32 127, %v256_v3  ;;  %v3101_v12 = vcombine.low %v3592_v8, %v3592_v8  ;;  %v3601_v13 = vstv %s3032_s29 }
  0x5c   : > { %1641 = vmatprep.subr.bf16.mxu0 %v3098_v4  ;;  %1681 = vmatprep.subr.bf16.mxu1 %v3100_v6  ;;  %v3102_v14 = vcombine.high %v3592_v8, %v3592_v8  ;;  %v3103_v15 = vcombine.low %v3595_v9, %v3595_v9  ;;  %v3104_v16 = vcombine.high %v3595_v9, %v3595_v9 }
  0x5d   : > { %1642 = vmatpush1.bf16.xpose.msra.mxu0 %v3097_v5  ;;  %1682 = vmatpush1.bf16.xpose.msra.mxu1 %v3099_v7  ;;  %v260_v17 = vadd.s32 128, %v3597_v11  ;;  %v3610_v18 = vmul.u32 32768, %v257_v10  ;;  %v261_v19 = vadd.s32 256, %v3597_v11  ;;  %v262_v20 = vadd.s32 384, %v3597_v11 }
  0x5e   : > { %1721 = vmatprep.subr.bf16.mxu0 %v3102_v14  ;;  %1761 = vmatprep.subr.bf16.mxu1 %v3104_v16  ;;  %v263_v21 = vadd.s32 512, %v3597_v11  ;;  %v264_v22 = vadd.s32 640, %v3597_v11  ;;  %v265_v23 = vadd.s32 768, %v3597_v11  ;;  %v266_v24 = vadd.s32 896, %v3597_v11 }
  0x5f   : > { %v324_v25 = vadd.s32 %v3610_v18, %v3597_v11  ;;  %v325_v26 = vadd.s32 %v3610_v18, %v260_v17  ;;  %v3621_v27 = vstv %s454_s10  ;;  %v326_v28 = vadd.s32 %v3610_v18, %v261_v19 }
  0x60   : > { %v327_v29 = vadd.s32 %v3610_v18, %v262_v20  ;;  %v328_v30 = vadd.s32 %v3610_v18, %v263_v21  ;;  %v329_v31 = vadd.s32 %v3610_v18, %v264_v22  ;;  %v330_v32 = vadd.s32 %v3610_v18, %v265_v23 }
  0x61   : > { %v390_v33 = vadd.s32 %v3601_v13, %v324_v25  ;;  %v391_v34 = vadd.s32 %v3601_v13, %v325_v26  ;;  %v392_v35 = vadd.s32 %v3601_v13, %v326_v28  ;;  %v331_v36 = vadd.s32 %v3610_v18, %v266_v24 }
  0x62   : > { %v393_v37 = vadd.s32 %v3601_v13, %v327_v29  ;;  %v394_v38 = vadd.s32 %v3601_v13, %v328_v30  ;;  %v395_v39 = vadd.s32 %v3601_v13, %v329_v31  ;;  %v396_v40 = vadd.s32 %v3601_v13, %v330_v32 }
  0x63   : > { %v456_v41 = vadd.s32 %v3621_v27, %v390_v33  ;;  %v457_v42 = vadd.s32 %v3621_v27, %v391_v34  ;;  %v458_v43 = vadd.s32 %v3621_v27, %v392_v35  ;;  %v397_v44 = vadd.s32 %v3601_v13, %v331_v36 }
  0x64   : > { %v459_v45 = vadd.s32 %v3621_v27, %v393_v37  ;;  %v460_v46 = vadd.s32 %v3621_v27, %v394_v38  ;;  %v461_v47 = vadd.s32 %v3621_v27, %v395_v39  ;;  %v462_v48 = vadd.s32 %v3621_v27, %v396_v40 }
  0x65   : > { %v520_v49 = vshrl.u32 %v456_v41, 16  ;;  %v521_v50 = vshrl.u32 %v457_v42, 16  ;;  %v522_v51 = vshrl.u32 %v458_v43, 16  ;;  %v463_v52 = vadd.s32 %v3621_v27, %v397_v44 }
  0x66   : > { %v523_v53 = vshrl.u32 %v459_v45, 16  ;;  %v524_v54 = vshrl.u32 %v460_v46, 16  ;;  %v525_v55 = vshrl.u32 %v461_v47, 16  ;;  %v526_v56 = vshrl.u32 %v462_v48, 16 }
  0x67   : > { %v584_v58 = vxor.u32 %v520_v49, %v456_v41  ;;  %v585_v59 = vxor.u32 %v521_v50, %v457_v42  ;;  %v586_v60 = vxor.u32 %v522_v51, %v458_v43  ;;  %v527_v61 = vshrl.u32 %v463_v52, 16 }
  0x68   : > { %v587_v63 = vxor.u32 %v523_v53, %v459_v45  ;;  %v588_v0 = vxor.u32 %v524_v54, %v460_v46  ;;  %v589_v1 = vxor.u32 %v525_v55, %v461_v47  ;;  %v590_v2 = vxor.u32 %v526_v56, %v462_v48  ;;  %v224_v55 = vld [vmem:[%s3575_s30] sm:$0xff] }
  0x69   : > { %v648_v3 = vmul.u32 2246822507, %v584_v58  ;;  %v649_v4 = vmul.u32 2246822507, %v585_v59  ;;  %v591_v5 = vxor.u32 %v527_v61, %v463_v52  ;;  %v3105_v6 = vcombine.low %v3646_v57, %v3646_v57  ;;  %v225_v61 = vld [vmem:[%s3575_s30 + $0x8] sm:$0xff] }
  0x6a   : > { %v650_v7 = vmul.u32 2246822507, %v586_v60  ;;  %v651_v10 = vmul.u32 2246822507, %v587_v63  ;;  %v3106_v14 = vcombine.high %v3646_v57, %v3646_v57  ;;  %v3107_v16 = vcombine.low %v3649_v62, %v3649_v62 }
  0x6b   : > { %v712_v17 = vshrl.u32 %v648_v3, 13  ;;  %v713_v19 = vshrl.u32 %v649_v4, 13  ;;  %v652_v20 = vmul.u32 2246822507, %v588_v0  ;;  %v653_v21 = vmul.u32 2246822507, %v589_v1 }
  0x6c   : > { %v714_v22 = vshrl.u32 %v650_v7, 13  ;;  %v715_v23 = vshrl.u32 %v651_v10, 13  ;;  %v654_v24 = vmul.u32 2246822507, %v590_v2  ;;  %v655_v25 = vmul.u32 2246822507, %v591_v5 }
  0x6d   : > { %v776_v26 = vxor.u32 %v712_v17, %v648_v3  ;;  %v777_v28 = vxor.u32 %v713_v19, %v649_v4  ;;  %v716_v29 = vshrl.u32 %v652_v20, 13  ;;  %v717_v30 = vshrl.u32 %v653_v21, 13  ;;  %v226_v1 = vld [vmem:[%s3575_s30 + $0x10] sm:$0xff]  ;;  %v227_v19 = vld [vmem:[%s3575_s30 + $0x18] sm:$0xff] }
  0x6e   : > { %v778_v31 = vxor.u32 %v714_v22, %v650_v7  ;;  %v779_v32 = vxor.u32 %v715_v23, %v651_v10  ;;  %v718_v33 = vshrl.u32 %v654_v24, 13  ;;  %v719_v34 = vshrl.u32 %v655_v25, 13 }
  0x6f   : > { %v840_v35 = vmul.u32 3266489909, %v776_v26  ;;  %v841_v36 = vmul.u32 3266489909, %v777_v28  ;;  %v780_v37 = vxor.u32 %v716_v29, %v652_v20  ;;  %v781_v38 = vxor.u32 %v717_v30, %v653_v21  ;;  %v3664_v20 = vld [vmem:[%s3581_s8 + $0x30] sm:$0xff] }
  0x70   : > { %v842_v39 = vmul.u32 3266489909, %v778_v31  ;;  %v843_v40 = vmul.u32 3266489909, %v779_v32  ;;  %v782_v41 = vxor.u32 %v718_v33, %v654_v24  ;;  %v783_v42 = vxor.u32 %v719_v34, %v655_v25  ;;  %v3673_v33 = vld [vmem:[%s3581_s8 + $0x38] sm:$0xff] }
  0x71   : > { %v904_v43 = vshrl.u32 %v840_v35, 16  ;;  %v905_v44 = vshrl.u32 %v841_v36, 16  ;;  %v844_v45 = vmul.u32 3266489909, %v780_v37  ;;  %v845_v46 = vmul.u32 3266489909, %v781_v38 }
  0x72   : > { %v906_v47 = vshrl.u32 %v842_v39, 16  ;;  %v907_v48 = vshrl.u32 %v843_v40, 16  ;;  %v846_v49 = vmul.u32 3266489909, %v782_v41  ;;  %v847_v50 = vmul.u32 3266489909, %v783_v42 }
  0x73   : > { %v968_v51 = vxor.u32 %v904_v43, %v840_v35  ;;  %v969_v52 = vxor.u32 %v905_v44, %v841_v36  ;;  %v908_v53 = vshrl.u32 %v844_v45, 16  ;;  %v909_v54 = vshrl.u32 %v845_v46, 16 }
  0x74   : > { %v970_v56 = vxor.u32 %v906_v47, %v842_v39  ;;  %v971_v58 = vxor.u32 %v907_v48, %v843_v40  ;;  %v910_v59 = vshrl.u32 %v846_v49, 16  ;;  %v911_v60 = vshrl.u32 %v847_v50, 16 }
  0x75   : > { %vm1032_vm1 = vcmp.ge.u32.totalorder %v968_v51, 429496729  ;;  %vm1033_vm2 = vcmp.ge.u32.totalorder %v969_v52, 429496729  ;;  %v972_v63 = vxor.u32 %v908_v53, %v844_v45  ;;  %v973_v0 = vxor.u32 %v909_v54, %v845_v46 }
  0x76   : > { %vm1096_vm3 = vmpackc.low %vm1033_vm2, %vm1032_vm1  ;;  %vm1034_vm4 = vcmp.ge.u32.totalorder %v970_v56, 429496729  ;;  %vm1035_vm5 = vcmp.ge.u32.totalorder %v971_v58, 429496729  ;;  %v974_v2 = vxor.u32 %v910_v59, %v846_v49  ;;  %v975_v3 = vxor.u32 %v911_v60, %v847_v50 }
  0x77   : > { %v1128_v4 = vsel %vm1096_vm3, %v224_v55, 0  ;;  %vm1097_vm6 = vmpackc.low %vm1035_vm5, %vm1034_vm4  ;;  %vm1036_vm7 = vcmp.ge.u32.totalorder %v972_v63, 429496729  ;;  %vm1037_vm8 = vcmp.ge.u32.totalorder %v973_v0, 429496729  ;;  %v3108_v5 = vcombine.high %v3649_v62, %v3649_v62 }
  0x78   : > { %v3033_v7 = vcombine.low %v1128_v4, %v1128_v4  ;;  %v3034_v10 = vcombine.high %v1128_v4, %v1128_v4  ;;  %v1129_v17 = vsel %vm1097_vm6, %v225_v61, 0  ;;  %vm1098_vm9 = vmpackc.low %vm1037_vm8, %vm1036_vm7  ;;  %vm1038_vm10 = vcmp.ge.u32.totalorder %v974_v2, 429496729  ;;  %v3719_v2 = vld [vmem:[%s3581_s8 + $0x40] sm:$0xff] }
  0x79   : > { %v3035_v21 = vcombine.low %v1129_v17, %v1129_v17  ;;  %v3036_v22 = vcombine.high %v1129_v17, %v1129_v17  ;;  %v1130_v23 = vsel %vm1098_vm9, %v226_v1, 0  ;;  %vm1039_vm11 = vcmp.ge.u32.totalorder %v975_v3, 429496729 }
  0x7a   : > { %1673 = vmatprep.mubr.bf16.mxu0 %v3034_v10  ;;  %v3037_v24 = vcombine.low %v1130_v23, %v1130_v23  ;;  %v3038_v25 = vcombine.high %v1130_v23, %v1130_v23  ;;  %vm1099_vm12 = vmpackc.low %vm1039_vm11, %vm1038_vm10  ;;  %v267_v26 = vadd.s32 1024, %v3597_v11  ;;  %v268_v28 = vadd.s32 1152, %v3597_v11 }
  0x7b   : > { %1713 = vmatprep.mubr.bf16.mxu1 %v3036_v22  ;;  %1674 = vmatmul.mubr.bf16.vlgmr.msra.gmra.mrb[0].mxu0 %v3033_v7  ;;  %v1131_v29 = vsel %vm1099_vm12, %v227_v19, 0  ;;  %v269_v30 = vadd.s32 1280, %v3597_v11  ;;  %v270_v31 = vadd.s32 1408, %v3597_v11  ;;  %v3109_v32 = vcombine.low %v3664_v20, %v3664_v20 }
  0x7c   : > { %1714 = vmatmul.mubr.bf16.vlgmr.msra.gmra.mrb[0].mxu1 %v3035_v21  ;;  %1722 = vmatpush1.bf16.xpose.msra.mxu0 %v3101_v12  ;;  %v3039_v34 = vcombine.low %v1131_v29, %v1131_v29  ;;  %v3040_v35 = vcombine.high %v1131_v29, %v1131_v29  ;;  %v332_v36 = vadd.s32 %v3610_v18, %v267_v26  ;;  %v271_v37 = vadd.s32 1536, %v3597_v11 }
  0x7d   : > { %1762 = vmatpush1.bf16.xpose.msra.mxu1 %v3103_v15  ;;  %1753 = vmatprep.mubr.bf16.mxu0 %v3038_v25  ;;  %v333_v38 = vadd.s32 %v3610_v18, %v268_v28  ;;  %v334_v39 = vadd.s32 %v3610_v18, %v269_v30  ;;  %v335_v40 = vadd.s32 %v3610_v18, %v270_v31  ;;  %v272_v8 = vadd.s32 1664, %v3597_v11 }
  0x7e   : > { %1793 = vmatprep.mubr.bf16.mxu1 %v3040_v35  ;;  %1801 = vmatprep.subr.bf16.mxu0 %v3106_v14  ;;  %v398_v12 = vadd.s32 %v3601_v13, %v332_v36  ;;  %v3110_v9 = vcombine.high %v3664_v20, %v3664_v20  ;;  %v3111_v15 = vcombine.low %v3673_v33, %v3673_v33  ;;  %v273_v41 = vadd.s32 1792, %v3597_v11 }
  0x7f   : > { %1841 = vmatprep.subr.bf16.mxu1 %v3108_v5  ;;  %v399_v42 = vadd.s32 %v3601_v13, %v333_v38  ;;  %v400_v43 = vadd.s32 %v3601_v13, %v334_v39  ;;  %v401_v44 = vadd.s32 %v3601_v13, %v335_v40  ;;  %v3112_v14 = vcombine.high %v3673_v33, %v3673_v33 }
  0x80   : > { %v464_v45 = vadd.s32 %v3621_v27, %v398_v12  ;;  %v336_v46 = vadd.s32 %v3610_v18, %v271_v37  ;;  %v337_v47 = vadd.s32 %v3610_v18, %v272_v8  ;;  %v274_v48 = vadd.s32 1920, %v3597_v11 }
  0x81   : > { %v465_v49 = vadd.s32 %v3621_v27, %v399_v42  ;;  %v466_v50 = vadd.s32 %v3621_v27, %v400_v43  ;;  %v467_v51 = vadd.s32 %v3621_v27, %v401_v44  ;;  %v338_v52 = vadd.s32 %v3610_v18, %v273_v41 }
  0x82   : > { %v528_v53 = vshrl.u32 %v464_v45, 16  ;;  %v402_v54 = vadd.s32 %v3601_v13, %v336_v46  ;;  %v403_v55 = vadd.s32 %v3601_v13, %v337_v47  ;;  %v339_v56 = vadd.s32 %v3610_v18, %v274_v48 }
  0x83   : > { %1754 = vmatmul.mubr.bf16.vlgmr.msra.gmra.mrb[4].mxu0 %v3037_v24  ;;  %v529_v58 = vshrl.u32 %v465_v49, 16  ;;  %v530_v59 = vshrl.u32 %v466_v50, 16  ;;  %v531_v60 = vshrl.u32 %v467_v51, 16  ;;  %v404_v61 = vadd.s32 %v3601_v13, %v338_v52 }
  0x84   : > { %1794 = vmatmul.mubr.bf16.vlgmr.msra.gmra.mrb[4].mxu1 %v3039_v34  ;;  %1802 = vmatpush1.bf16.xpose.msra.mxu0 %v3105_v6  ;;  %v592_v63 = vxor.u32 %v528_v53, %v464_v45  ;;  %v468_v0 = vadd.s32 %v3621_v27, %v402_v54  ;;  %v469_v1 = vadd.s32 %v3621_v27, %v403_v55  ;;  %v3722_v3 = vadd.s32 2048, %v3597_v11 }
  0x85   : > { %1842 = vmatpush1.bf16.xpose.msra.mxu1 %v3107_v16  ;;  %v593_v4 = vxor.u32 %v529_v58, %v465_v49  ;;  %v594_v5 = vxor.u32 %v530_v59, %v466_v50  ;;  %v595_v7 = vxor.u32 %v531_v60, %v467_v51  ;;  %1881 = vmatprep.subr.bf16.mxu0 %v3110_v9  ;;  %v3728_v57 = vadd.s32 2176, %v3597_v11 }
  0x86   : > { %v656_v6 = vmul.u32 2246822507, %v592_v63  ;;  %1921 = vmatprep.subr.bf16.mxu1 %v3112_v14  ;;  %v532_v10 = vshrl.u32 %v468_v0, 16  ;;  %v533_v17 = vshrl.u32 %v469_v1, 16  ;;  %v405_v19 = vadd.s32 %v3601_v13, %v339_v56 }
  0x87   : > { %v657_v21 = vmul.u32 2246822507, %v593_v4  ;;  %v658_v22 = vmul.u32 2246822507, %v594_v5  ;;  %v470_v23 = vadd.s32 %v3621_v27, %v404_v61  ;;  %v3113_v62 = vcombine.low %v3719_v2, %v3719_v2 }
  0x88   : > { %v720_v16 = vshrl.u32 %v656_v6, 13  ;;  %v659_v24 = vmul.u32 2246822507, %v595_v7  ;;  %v596_v25 = vxor.u32 %v532_v10, %v468_v0  ;;  %v597_v26 = vxor.u32 %v533_v17, %v469_v1  ;;  %v3738_v0 = vld [vmem:[%s3581_s8 + $0x48] sm:$0xff]  ;;  %v228_v1 = vld [vmem:[%s3575_s30 + $0x20] sm:$0xff] }
  0x89   : > { %v721_v28 = vshrl.u32 %v657_v21, 13  ;;  %v722_v29 = vshrl.u32 %v658_v22, 13  ;;  %v471_v30 = vadd.s32 %v3621_v27, %v405_v19  ;;  %v534_v31 = vshrl.u32 %v470_v23, 16 }
  0x8a   : > { %v784_v34 = vxor.u32 %v720_v16, %v656_v6  ;;  %v723_v35 = vshrl.u32 %v659_v24, 13  ;;  %v660_v36 = vmul.u32 2246822507, %v596_v25  ;;  %v661_v37 = vmul.u32 2246822507, %v597_v26  ;;  %v229_v6 = vld [vmem:[%s3575_s30 + $0x28] sm:$0xff] }
  0x8b   : > { %v785_v38 = vxor.u32 %v721_v28, %v657_v21  ;;  %v786_v39 = vxor.u32 %v722_v29, %v658_v22  ;;  %v535_v40 = vshrl.u32 %v471_v30, 16  ;;  %v598_v8 = vxor.u32 %v534_v31, %v470_v23  ;;  %v3748_v31 = vld [vmem:[%s3581_s8 + $0x50] sm:$0xff] }
  0x8c   : > { %v848_v12 = vmul.u32 3266489909, %v784_v34  ;;  %v787_v9 = vxor.u32 %v723_v35, %v659_v24  ;;  %v724_v41 = vshrl.u32 %v660_v36, 13  ;;  %v725_v42 = vshrl.u32 %v661_v37, 13 }
  0x8d   : > { %v849_v43 = vmul.u32 3266489909, %v785_v38  ;;  %v850_v44 = vmul.u32 3266489909, %v786_v39  ;;  %v599_v14 = vxor.u32 %v535_v40, %v471_v30  ;;  %v3114_v45 = vcombine.high %v3719_v2, %v3719_v2  ;;  %v230_v30 = vld [vmem:[%s3575_s30 + $0x30] sm:$0xff] }
  0x8e   : > { %v912_v46 = vshrl.u32 %v848_v12, 16  ;;  %v851_v47 = vmul.u32 3266489909, %v787_v9  ;;  %v788_v48 = vxor.u32 %v724_v41, %v660_v36  ;;  %v789_v49 = vxor.u32 %v725_v42, %v661_v37  ;;  %v3759_v42 = vld [vmem:[%s3581_s8 + $0x58] sm:$0xff] }
  0x8f   : > { %v913_v50 = vshrl.u32 %v849_v43, 16  ;;  %v914_v51 = vshrl.u32 %v850_v44, 16  ;;  %v662_v52 = vmul.u32 2246822507, %v598_v8  ;;  %v663_v53 = vmul.u32 2246822507, %v599_v14 }
  0x90   : > { %v976_v54 = vxor.u32 %v912_v46, %v848_v12  ;;  %v915_v55 = vshrl.u32 %v851_v47, 16  ;;  %v852_v56 = vmul.u32 3266489909, %v788_v48  ;;  %v853_v58 = vmul.u32 3266489909, %v789_v49  ;;  %v231_v14 = vld [vmem:[%s3575_s30 + $0x38] sm:$0xff] }
  0x91   : > { %v977_v59 = vxor.u32 %v913_v50, %v849_v43  ;;  %v978_v60 = vxor.u32 %v914_v51, %v850_v44  ;;  %v726_v61 = vshrl.u32 %v662_v52, 13  ;;  %v727_v63 = vshrl.u32 %v663_v53, 13 }
  0x92   : > { %vm1040_vm13 = vcmp.ge.u32.totalorder %v976_v54, 429496729  ;;  %v979_v4 = vxor.u32 %v915_v55, %v851_v47  ;;  %v916_v5 = vshrl.u32 %v852_v56, 16  ;;  %v917_v7 = vshrl.u32 %v853_v58, 16 }
  0x93   : > { %vm1041_vm14 = vcmp.ge.u32.totalorder %v977_v59, 429496729  ;;  %vm1042_vm15 = vcmp.ge.u32.totalorder %v978_v60, 429496729  ;;  %v790_v10 = vxor.u32 %v726_v61, %v662_v52  ;;  %v791_v17 = vxor.u32 %v727_v63, %v663_v53 }
  0x94   : > { %vm1100_vm0 = vmpackc.low %vm1041_vm14, %vm1040_vm13  ;;  %vm1043_vm1 = vcmp.ge.u32.totalorder %v979_v4, 429496729  ;;  %v980_v19 = vxor.u32 %v916_v5, %v852_v56  ;;  %v981_v21 = vxor.u32 %v917_v7, %v853_v58  ;;  %v3115_v22 = vcombine.low %v3738_v0, %v3738_v0 }
  0x95   : > { %v1132_v23 = vsel %vm1100_vm0, %v228_v1, 0  ;;  %vm1101_vm2 = vmpackc.low %vm1043_vm1, %vm1042_vm15  ;;  %v854_v16 = vmul.u32 3266489909, %v790_v10  ;;  %v855_v24 = vmul.u32 3266489909, %v791_v17  ;;  %v3116_v25 = vcombine.high %v3738_v0, %v3738_v0 }
  0x96   : > { %v3041_v26 = vcombine.low %v1132_v23, %v1132_v23  ;;  %v3042_v28 = vcombine.high %v1132_v23, %v1132_v23  ;;  %v1133_v29 = vsel %vm1101_vm2, %v229_v6, 0  ;;  %vm1044_vm3 = vcmp.ge.u32.totalorder %v980_v19, 429496729 }
  0x97   : > { %v3043_v34 = vcombine.low %v1133_v29, %v1133_v29  ;;  %v3044_v35 = vcombine.high %v1133_v29, %v1133_v29  ;;  %vm1045_vm4 = vcmp.ge.u32.totalorder %v981_v21, 429496729  ;;  %v918_v36 = vshrl.u32 %v854_v16, 16 }
  0x98   : > { %1833 = vmatprep.mubr.bf16.mxu0 %v3042_v28  ;;  %vm1102_vm5 = vmpackc.low %vm1045_vm4, %vm1044_vm3  ;;  %v919_v37 = vshrl.u32 %v855_v24, 16  ;;  %v340_v38 = vadd.s32 %v3610_v18, %v3722_v3  ;;  %v341_v39 = vadd.s32 %v3610_v18, %v3728_v57  ;;  %v277_v40 = vadd.s32 2304, %v3597_v11 }
  0x99   : > { %1873 = vmatprep.mubr.bf16.mxu1 %v3044_v35  ;;  %1834 = vmatmul.mubr.bf16.vlgmr.msra.gmra.mrb[8].mxu0 %v3041_v26  ;;  %v1134_v8 = vsel %vm1102_vm5, %v230_v30, 0  ;;  %v982_v12 = vxor.u32 %v918_v36, %v854_v16  ;;  %v278_v9 = vadd.s32 2432, %v3597_v11  ;;  %v3117_v41 = vcombine.low %v3748_v31, %v3748_v31 }
  0x9a   : > { %1874 = vmatmul.mubr.bf16.vlgmr.msra.gmra.mrb[8].mxu1 %v3043_v34  ;;  %1882 = vmatpush1.bf16.xpose.msra.mxu0 %v3109_v32  ;;  %v3045_v3 = vcombine.low %v1134_v8, %v1134_v8  ;;  %v3046_v57 = vcombine.high %v1134_v8, %v1134_v8  ;;  %v983_v43 = vxor.u32 %v919_v37, %v855_v24  ;;  %v279_v44 = vadd.s32 2560, %v3597_v11 }
  0x9b   : > { %1922 = vmatpush1.bf16.xpose.msra.mxu1 %v3111_v15  ;;  %vm1046_vm6 = vcmp.ge.u32.totalorder %v982_v12, 429496729  ;;  %1961 = vmatprep.subr.bf16.mxu0 %v3114_v45  ;;  %v406_v46 = vadd.s32 %v3601_v13, %v340_v38  ;;  %v407_v20 = vadd.s32 %v3601_v13, %v341_v39  ;;  %v342_v32 = vadd.s32 %v3610_v18, %v277_v40 }
  0x9c   : > { %1913 = vmatprep.mubr.bf16.mxu0 %v3046_v57  ;;  %vm1047_vm7 = vcmp.ge.u32.totalorder %v983_v43, 429496729  ;;  %2001 = vmatprep.subr.bf16.mxu1 %v3116_v25  ;;  %v343_v47 = vadd.s32 %v3610_v18, %v278_v9  ;;  %v3118_v33 = vcombine.high %v3748_v31, %v3748_v31  ;;  %v3119_v15 = vcombine.low %v3759_v42, %v3759_v42 }
  0x9d   : > { %vm1103_vm8 = vmpackc.low %vm1047_vm7, %vm1046_vm6  ;;  %v472_v45 = vadd.s32 %v3621_v27, %v406_v46  ;;  %v473_v48 = vadd.s32 %v3621_v27, %v407_v20  ;;  %v408_v49 = vadd.s32 %v3601_v13, %v342_v32  ;;  %v3120_v50 = vcombine.high %v3759_v42, %v3759_v42 }
  0x9e   : > { %v1135_v51 = vsel %vm1103_vm8, %v231_v14, 0  ;;  %v409_v52 = vadd.s32 %v3601_v13, %v343_v47  ;;  %v280_v53 = vadd.s32 2688, %v3597_v11  ;;  %v344_v54 = vadd.s32 %v3610_v18, %v279_v44 }
  0x9f   : > { %v3047_v55 = vcombine.low %v1135_v51, %v1135_v51  ;;  %v3048_v56 = vcombine.high %v1135_v51, %v1135_v51  ;;  %v536_v58 = vshrl.u32 %v472_v45, 16  ;;  %v537_v59 = vshrl.u32 %v473_v48, 16 }
  0xa0   : > { %v474_v60 = vadd.s32 %v3621_v27, %v408_v49  ;;  %v475_v61 = vadd.s32 %v3621_v27, %v409_v52  ;;  %v345_v63 = vadd.s32 %v3610_v18, %v280_v53  ;;  %v410_v1 = vadd.s32 %v3601_v13, %v344_v54 }
  0xa1   : > { %1953 = vmatprep.mubr.bf16.mxu1 %v3048_v56  ;;  %1914 = vmatmul.mubr.bf16.vlgmr.msra.gmra.mrb[12].mxu0 %v3045_v3  ;;  %v600_v4 = vxor.u32 %v536_v58, %v472_v45  ;;  %v601_v5 = vxor.u32 %v537_v59, %v473_v48  ;;  %v281_v7 = vadd.s32 2816, %v3597_v11  ;;  %v282_v6 = vadd.s32 2944, %v3597_v11 }
  0xa2   : > { %1954 = vmatmul.mubr.bf16.vlgmr.msra.gmra.mrb[12].mxu1 %v3047_v55  ;;  %1962 = vmatpush1.bf16.xpose.msra.mxu0 %v3113_v62  ;;  %v538_v10 = vshrl.u32 %v474_v60, 16  ;;  %v539_v17 = vshrl.u32 %v475_v61, 16  ;;  %v411_v19 = vadd.s32 %v3601_v13, %v345_v63  ;;  %v476_v21 = vadd.s32 %v3621_v27, %v410_v1 }
  0xa3   : > { %2002 = vmatpush1.bf16.xpose.msra.mxu1 %v3115_v22  ;;  %v664_v23 = vmul.u32 2246822507, %v600_v4  ;;  %v665_v16 = vmul.u32 2246822507, %v601_v5  ;;  %2041 = vmatprep.subr.bf16.mxu0 %v3118_v33  ;;  %v346_v24 = vadd.s32 %v3610_v18, %v281_v7  ;;  %v347_v25 = vadd.s32 %v3610_v18, %v282_v6  ;;  %v3811_v5 = vld [vmem:[%s3581_s8 + $0x60] sm:$0xff] }
  0xa4   : > { %v602_v26 = vxor.u32 %v538_v10, %v474_v60  ;;  %v603_v2 = vxor.u32 %v539_v17, %v475_v61  ;;  %2081 = vmatprep.subr.bf16.mxu1 %v3120_v50  ;;  %v477_v62 = vadd.s32 %v3621_v27, %v411_v19  ;;  %v540_v28 = vshrl.u32 %v476_v21, 16  ;;  %v232_v60 = vld [vmem:[%s3575_s30 + $0x40] sm:$0xff] }
  0xa5   : > { %v728_v29 = vshrl.u32 %v664_v23, 13  ;;  %v729_v30 = vshrl.u32 %v665_v16, 13  ;;  %v412_v34 = vadd.s32 %v3601_v13, %v346_v24  ;;  %v413_v0 = vadd.s32 %v3601_v13, %v347_v25 }
  0xa6   : > { %v666_v22 = vmul.u32 2246822507, %v602_v26  ;;  %v667_v35 = vmul.u32 2246822507, %v603_v2  ;;  %v541_v36 = vshrl.u32 %v477_v62, 16  ;;  %v604_v37 = vxor.u32 %v540_v28, %v476_v21  ;;  %v3817_v2 = vld [vmem:[%s3581_s8 + $0x68] sm:$0xff] }
  0xa7   : > { %v792_v38 = vxor.u32 %v728_v29, %v664_v23  ;;  %v793_v39 = vxor.u32 %v729_v30, %v665_v16  ;;  %v478_v40 = vadd.s32 %v3621_v27, %v412_v34  ;;  %v479_v8 = vadd.s32 %v3621_v27, %v413_v0  ;;  %v233_v16 = vld [vmem:[%s3575_s30 + $0x48] sm:$0xff] }
  0xa8   : > { %v730_v12 = vshrl.u32 %v666_v22, 13  ;;  %v731_v9 = vshrl.u32 %v667_v35, 13  ;;  %v605_v3 = vxor.u32 %v541_v36, %v477_v62  ;;  %v668_v57 = vmul.u32 2246822507, %v604_v37 }
  0xa9   : > { %v856_v43 = vmul.u32 3266489909, %v792_v38  ;;  %v857_v44 = vmul.u32 3266489909, %v793_v39  ;;  %v542_v14 = vshrl.u32 %v478_v40, 16  ;;  %v543_v46 = vshrl.u32 %v479_v8, 16 }
  0xaa   : > { %v794_v20 = vxor.u32 %v730_v12, %v666_v22  ;;  %v795_v32 = vxor.u32 %v731_v9, %v667_v35  ;;  %v669_v47 = vmul.u32 2246822507, %v605_v3  ;;  %v732_v33 = vshrl.u32 %v668_v57, 13  ;;  %v3826_v38 = vld [vmem:[%s3581_s8 + $0x70] sm:$0xff] }
  0xab   : > { %v920_v45 = vshrl.u32 %v856_v43, 16  ;;  %v921_v48 = vshrl.u32 %v857_v44, 16  ;;  %v606_v49 = vxor.u32 %v542_v14, %v478_v40  ;;  %v607_v50 = vxor.u32 %v543_v46, %v479_v8  ;;  %v234_v12 = vld [vmem:[%s3575_s30 + $0x50] sm:$0xff] }
  0xac   : > { %v858_v51 = vmul.u32 3266489909, %v794_v20  ;;  %v859_v52 = vmul.u32 3266489909, %v795_v32  ;;  %v733_v53 = vshrl.u32 %v669_v47, 13  ;;  %v796_v54 = vxor.u32 %v732_v33, %v668_v57  ;;  %v235_v33 = vld [vmem:[%s3575_s30 + $0x58] sm:$0xff] }
  0xad   : > { %v984_v55 = vxor.u32 %v920_v45, %v856_v43  ;;  %v985_v56 = vxor.u32 %v921_v48, %v857_v44  ;;  %v670_v58 = vmul.u32 2246822507, %v606_v49  ;;  %v671_v59 = vmul.u32 2246822507, %v607_v50  ;;  %v3849_v50 = vld [vmem:[%s3581_s8 + $0x78] sm:$0xff] }
  0xae   : > { %v922_v61 = vshrl.u32 %v858_v51, 16  ;;  %v923_v63 = vshrl.u32 %v859_v52, 16  ;;  %v797_v1 = vxor.u32 %v733_v53, %v669_v47  ;;  %v860_v4 = vmul.u32 3266489909, %v796_v54 }
  0xaf   : > { %vm1048_vm9 = vcmp.ge.u32.totalorder %v984_v55, 429496729  ;;  %vm1049_vm10 = vcmp.ge.u32.totalorder %v985_v56, 429496729  ;;  %v734_v7 = vshrl.u32 %v670_v58, 13  ;;  %v735_v6 = vshrl.u32 %v671_v59, 13 }
  0xb0   : > { %vm1104_vm11 = vmpackc.low %vm1049_vm10, %vm1048_vm9  ;;  %v986_v10 = vxor.u32 %v922_v61, %v858_v51  ;;  %v987_v17 = vxor.u32 %v923_v63, %v859_v52  ;;  %v861_v19 = vmul.u32 3266489909, %v797_v1  ;;  %v924_v21 = vshrl.u32 %v860_v4, 16 }
  0xb1   : > { %v1136_v23 = vsel %vm1104_vm11, %v232_v60, 0  ;;  %v798_v24 = vxor.u32 %v734_v7, %v670_v58  ;;  %v799_v25 = vxor.u32 %v735_v6, %v671_v59  ;;  %v3121_v26 = vcombine.low %v3811_v5, %v3811_v5 }
  0xb2   : > { %v3049_v62 = vcombine.low %v1136_v23, %v1136_v23  ;;  %v3050_v28 = vcombine.high %v1136_v23, %v1136_v23  ;;  %vm1050_vm12 = vcmp.ge.u32.totalorder %v986_v10, 429496729  ;;  %vm1051_vm13 = vcmp.ge.u32.totalorder %v987_v17, 429496729 }
  0xb3   : > { %vm1105_vm14 = vmpackc.low %vm1051_vm13, %vm1050_vm12  ;;  %v925_v29 = vshrl.u32 %v861_v19, 16  ;;  %v988_v30 = vxor.u32 %v924_v21, %v860_v4  ;;  %v862_v34 = vmul.u32 3266489909, %v798_v24  ;;  %v863_v0 = vmul.u32 3266489909, %v799_v25 }
  0xb4   : > { %1993 = vmatprep.mubr.bf16.mxu0 %v3050_v28  ;;  %v1137_v22 = vsel %vm1105_vm14, %v233_v16, 0  ;;  %v3122_v35 = vcombine.high %v3811_v5, %v3811_v5  ;;  %v3123_v36 = vcombine.low %v3817_v2, %v3817_v2  ;;  %v3124_v37 = vcombine.high %v3817_v2, %v3817_v2 }
  0xb5   : > { %v3051_v39 = vcombine.low %v1137_v22, %v1137_v22  ;;  %v3052_v40 = vcombine.high %v1137_v22, %v1137_v22  ;;  %1994 = vmatmul.mubr.bf16.vlgmr.msra.gmra.mrb[16].mxu0 %v3049_v62  ;;  %v989_v8 = vxor.u32 %v925_v29, %v861_v19  ;;  %vm1052_vm15 = vcmp.ge.u32.totalorder %v988_v30, 429496729 }
  0xb6   : > { %2042 = vmatpush1.bf16.xpose.msra.mxu0 %v3117_v41  ;;  %v926_v9 = vshrl.u32 %v862_v34, 16  ;;  %v927_v3 = vshrl.u32 %v863_v0, 16  ;;  %v283_v57 = vadd.s32 3072, %v3597_v11  ;;  %v284_v43 = vadd.s32 3200, %v3597_v11 }
  0xb7   : > { %2033 = vmatprep.mubr.bf16.mxu1 %v3052_v40  ;;  %vm1053_vm0 = vcmp.ge.u32.totalorder %v989_v8, 429496729  ;;  %2121 = vmatprep.subr.bf16.mxu0 %v3122_v35  ;;  %v285_v44 = vadd.s32 3328, %v3597_v11  ;;  %v286_v14 = vadd.s32 3456, %v3597_v11  ;;  %v3125_v31 = vcombine.low %v3826_v38, %v3826_v38 }
  0xb8   : > { %2034 = vmatmul.mubr.bf16.vlgmr.msra.gmra.mrb[16].mxu1 %v3051_v39  ;;  %vm1106_vm1 = vmpackc.low %vm1053_vm0, %vm1052_vm15  ;;  %v990_v41 = vxor.u32 %v926_v9, %v862_v34  ;;  %v991_v46 = vxor.u32 %v927_v3, %v863_v0  ;;  %v348_v20 = vadd.s32 %v3610_v18, %v283_v57  ;;  %v349_v32 = vadd.s32 %v3610_v18, %v284_v43 }
  0xb9   : > { %2082 = vmatpush1.bf16.xpose.msra.mxu1 %v3119_v15  ;;  %v1138_v47 = vsel %vm1106_vm1, %v234_v12, 0  ;;  %v350_v45 = vadd.s32 %v3610_v18, %v285_v44  ;;  %v351_v48 = vadd.s32 %v3610_v18, %v286_v14  ;;  %v3126_v49 = vcombine.high %v3826_v38, %v3826_v38 }
  0xba   : > { %v3053_v51 = vcombine.low %v1138_v47, %v1138_v47  ;;  %v3054_v52 = vcombine.high %v1138_v47, %v1138_v47  ;;  %vm1054_vm2 = vcmp.ge.u32.totalorder %v990_v41, 429496729  ;;  %vm1055_vm3 = vcmp.ge.u32.totalorder %v991_v46, 429496729  ;;  %2161 = vmatprep.subr.bf16.mxu1 %v3124_v37 }
  0xbb   : > { %vm1107_vm4 = vmpackc.low %vm1055_vm3, %vm1054_vm2  ;;  %v414_v42 = vadd.s32 %v3601_v13, %v348_v20  ;;  %v415_v15 = vadd.s32 %v3601_v13, %v349_v32  ;;  %v416_v53 = vadd.s32 %v3601_v13, %v350_v45  ;;  %v417_v54 = vadd.s32 %v3601_v13, %v351_v48  ;;  %v3886_v45 = vld [vmem:[%s3581_s8 + $0x80] sm:$0xff] }
  0xbc   : > { %2073 = vmatprep.mubr.bf16.mxu0 %v3054_v52  ;;  %v1139_v55 = vsel %vm1107_vm4, %v235_v33, 0  ;;  %v3127_v56 = vcombine.low %v3849_v50, %v3849_v50  ;;  %v3128_v58 = vcombine.high %v3849_v50, %v3849_v50  ;;  %v287_v59 = vadd.s32 3584, %v3597_v11 }
  0xbd   : > { %v3055_v60 = vcombine.low %v1139_v55, %v1139_v55  ;;  %v3056_v61 = vcombine.high %v1139_v55, %v1139_v55  ;;  %2074 = vmatmul.mubr.bf16.vlgmr.msra.gmra.mrb[20].mxu0 %v3053_v51  ;;  %v480_v63 = vadd.s32 %v3621_v27, %v414_v42  ;;  %v481_v1 = vadd.s32 %v3621_v27, %v415_v15 }
  0xbe   : > { %2122 = vmatpush1.bf16.xpose.msra.mxu0 %v3121_v26  ;;  %v482_v4 = vadd.s32 %v3621_v27, %v416_v53  ;;  %v483_v7 = vadd.s32 %v3621_v27, %v417_v54  ;;  %v288_v6 = vadd.s32 3712, %v3597_v11  ;;  %v352_v10 = vadd.s32 %v3610_v18, %v287_v59 }
  0xbf   : > { %2113 = vmatprep.mubr.bf16.mxu1 %v3056_v61  ;;  %v544_v17 = vshrl.u32 %v480_v63, 16  ;;  %v545_v19 = vshrl.u32 %v481_v1, 16  ;;  %2201 = vmatprep.subr.bf16.mxu0 %v3126_v49  ;;  %v289_v21 = vadd.s32 3840, %v3597_v11  ;;  %v290_v23 = vadd.s32 3968, %v3597_v11 }
  0xc0   : > { %2114 = vmatmul.mubr.bf16.vlgmr.msra.gmra.mrb[20].mxu1 %v3055_v60  ;;  %v546_v16 = vshrl.u32 %v482_v4, 16  ;;  %v547_v5 = vshrl.u32 %v483_v7, 16  ;;  %v353_v24 = vadd.s32 %v3610_v18, %v288_v6  ;;  %v418_v25 = vadd.s32 %v3601_v13, %v352_v10 }
  0xc1   : > { %2162 = vmatpush1.bf16.xpose.msra.mxu1 %v3123_v36  ;;  %v608_v26 = vxor.u32 %v544_v17, %v480_v63  ;;  %v609_v62 = vxor.u32 %v545_v19, %v481_v1  ;;  %v354_v28 = vadd.s32 %v3610_v18, %v289_v21  ;;  %v355_v29 = vadd.s32 %v3610_v18, %v290_v23 }
  0xc2   : > { %v610_v30 = vxor.u32 %v546_v16, %v482_v4  ;;  %v611_v34 = vxor.u32 %v547_v5, %v483_v7  ;;  %2241 = vmatprep.subr.bf16.mxu1 %v3128_v58  ;;  %v419_v0 = vadd.s32 %v3601_v13, %v353_v24  ;;  %v484_v22 = vadd.s32 %v3621_v27, %v418_v25  ;;  %v236_v5 = vld [vmem:[%s3575_s30 + $0x60] sm:$0xff] }
  0xc3   : > { %v672_v35 = vmul.u32 2246822507, %v608_v26  ;;  %v673_v37 = vmul.u32 2246822507, %v609_v62  ;;  %v420_v39 = vadd.s32 %v3601_v13, %v354_v28  ;;  %v421_v2 = vadd.s32 %v3601_v13, %v355_v29  ;;  %v237_v28 = vld [vmem:[%s3575_s30 + $0x68] sm:$0xff] }
  0xc4   : > { %v674_v36 = vmul.u32 2246822507, %v610_v30  ;;  %v675_v40 = vmul.u32 2246822507, %v611_v34  ;;  %v485_v8 = vadd.s32 %v3621_v27, %v419_v0  ;;  %v548_v12 = vshrl.u32 %v484_v22, 16 }
  0xc5   : > { %v736_v9 = vshrl.u32 %v672_v35, 13  ;;  %v737_v3 = vshrl.u32 %v673_v37, 13  ;;  %v486_v57 = vadd.s32 %v3621_v27, %v420_v39  ;;  %v487_v43 = vadd.s32 %v3621_v27, %v421_v2  ;;  %v3895_v2 = vld [vmem:[%s3581_s8 + $0x88] sm:$0xff] }
  0xc6   : > { %v738_v44 = vshrl.u32 %v674_v36, 13  ;;  %v739_v14 = vshrl.u32 %v675_v40, 13  ;;  %v549_v41 = vshrl.u32 %v485_v8, 16  ;;  %v612_v46 = vxor.u32 %v548_v12, %v484_v22 }
  0xc7   : > { %v800_v20 = vxor.u32 %v736_v9, %v672_v35  ;;  %v801_v32 = vxor.u32 %v737_v3, %v673_v37  ;;  %v550_v47 = vshrl.u32 %v486_v57, 16  ;;  %v551_v33 = vshrl.u32 %v487_v43, 16 }
  0xc8   : > { %v802_v48 = vxor.u32 %v738_v44, %v674_v36  ;;  %v803_v49 = vxor.u32 %v739_v14, %v675_v40  ;;  %v613_v51 = vxor.u32 %v549_v41, %v485_v8  ;;  %v676_v52 = vmul.u32 2246822507, %v612_v46  ;;  %v3898_v44 = vld [vmem:[%s3581_s8 + $0x90] sm:$0xff] }
  0xc9   : > { %v864_v42 = vmul.u32 3266489909, %v800_v20  ;;  %v865_v15 = vmul.u32 3266489909, %v801_v32  ;;  %v614_v53 = vxor.u32 %v550_v47, %v486_v57  ;;  %v615_v54 = vxor.u32 %v551_v33, %v487_v43 }
  0xca   : > { %v866_v55 = vmul.u32 3266489909, %v802_v48  ;;  %v867_v58 = vmul.u32 3266489909, %v803_v49  ;;  %v740_v59 = vshrl.u32 %v676_v52, 13  ;;  %v3129_v60 = vcombine.low %v3886_v45, %v3886_v45  ;;  %v238_v48 = vld [vmem:[%s3575_s30 + $0x70] sm:$0xff] }
  0xcb   : > { %v928_v61 = vshrl.u32 %v864_v42, 16  ;;  %v929_v63 = vshrl.u32 %v865_v15, 16  ;;  %v677_v1 = vmul.u32 2246822507, %v613_v51  ;;  %v678_v4 = vmul.u32 2246822507, %v614_v53 }
  0xcc   : > { %v930_v7 = vshrl.u32 %v866_v55, 16  ;;  %v931_v6 = vshrl.u32 %v867_v58, 16  ;;  %v804_v10 = vxor.u32 %v740_v59, %v676_v52  ;;  %v679_v17 = vmul.u32 2246822507, %v615_v54  ;;  %v239_v53 = vld [vmem:[%s3575_s30 + $0x78] sm:$0xff] }
  0xcd   : > { %v992_v19 = vxor.u32 %v928_v61, %v864_v42  ;;  %v993_v21 = vxor.u32 %v929_v63, %v865_v15  ;;  %v741_v23 = vshrl.u32 %v677_v1, 13  ;;  %v742_v16 = vshrl.u32 %v678_v4, 13 }
  0xce   : > { %v994_v24 = vxor.u32 %v930_v7, %v866_v55  ;;  %v995_v25 = vxor.u32 %v931_v6, %v867_v58  ;;  %v868_v26 = vmul.u32 3266489909, %v804_v10  ;;  %v743_v62 = vshrl.u32 %v679_v17, 13 }
  0xcf   : > { %vm1056_vm5 = vcmp.ge.u32.totalorder %v992_v19, 429496729  ;;  %vm1057_vm6 = vcmp.ge.u32.totalorder %v993_v21, 429496729  ;;  %v805_v29 = vxor.u32 %v741_v23, %v677_v1  ;;  %v806_v30 = vxor.u32 %v742_v16, %v678_v4 }
  0xd0   : > { %vm1108_vm7 = vmpackc.low %vm1057_vm6, %vm1056_vm5  ;;  %vm1058_vm8 = vcmp.ge.u32.totalorder %v994_v24, 429496729  ;;  %vm1059_vm9 = vcmp.ge.u32.totalorder %v995_v25, 429496729  ;;  %v932_v34 = vshrl.u32 %v868_v26, 16  ;;  %v807_v0 = vxor.u32 %v743_v62, %v679_v17 }
  0xd1   : > { %v1140_v22 = vsel %vm1108_vm7, %v236_v5, 0  ;;  %vm1109_vm10 = vmpackc.low %vm1059_vm9, %vm1058_vm8  ;;  %v869_v35 = vmul.u32 3266489909, %v805_v29  ;;  %v870_v37 = vmul.u32 3266489909, %v806_v30  ;;  %v3130_v39 = vcombine.high %v3886_v45, %v3886_v45 }
  0xd2   : > { %v3057_v36 = vcombine.low %v1140_v22, %v1140_v22  ;;  %v3058_v40 = vcombine.high %v1140_v22, %v1140_v22  ;;  %v1141_v8 = vsel %vm1109_vm10, %v237_v28, 0  ;;  %v996_v12 = vxor.u32 %v932_v34, %v868_v26 }
  0xd3   : > { %v3059_v9 = vcombine.low %v1141_v8, %v1141_v8  ;;  %v3060_v3 = vcombine.high %v1141_v8, %v1141_v8  ;;  %v933_v57 = vshrl.u32 %v869_v35, 16  ;;  %v871_v43 = vmul.u32 3266489909, %v807_v0 }
  0xd4   : > { %2153 = vmatprep.mubr.bf16.mxu0 %v3058_v40  ;;  %vm1060_vm11 = vcmp.ge.u32.totalorder %v996_v12, 429496729  ;;  %v934_v14 = vshrl.u32 %v870_v37, 16  ;;  %v3131_v41 = vcombine.low %v3895_v2, %v3895_v2  ;;  %v3132_v46 = vcombine.high %v3895_v2, %v3895_v2 }
  0xd5   : > { %2193 = vmatprep.mubr.bf16.mxu1 %v3060_v3  ;;  %2154 = vmatmul.mubr.bf16.vlgmr.msra.gmra.mrb[24].mxu0 %v3057_v36  ;;  %v997_v20 = vxor.u32 %v933_v57, %v869_v35  ;;  %v935_v32 = vshrl.u32 %v871_v43, 16  ;;  %v291_v47 = vadd.s32 4096, %v3597_v11  ;;  %v292_v33 = vadd.s32 4224, %v3597_v11 }
  0xd6   : > { %2194 = vmatmul.mubr.bf16.vlgmr.msra.gmra.mrb[24].mxu1 %v3059_v9  ;;  %2202 = vmatpush1.bf16.xpose.msra.mxu0 %v3125_v31  ;;  %v998_v49 = vxor.u32 %v934_v14, %v870_v37  ;;  %v293_v51 = vadd.s32 4352, %v3597_v11  ;;  %v294_v52 = vadd.s32 4480, %v3597_v11  ;;  %v3133_v42 = vcombine.low %v3898_v44, %v3898_v44 }
  0xd7   : > { %2242 = vmatpush1.bf16.xpose.msra.mxu1 %v3127_v56  ;;  %vm1061_vm12 = vcmp.ge.u32.totalorder %v997_v20, 429496729  ;;  %v999_v15 = vxor.u32 %v935_v32, %v871_v43  ;;  %2281 = vmatprep.subr.bf16.mxu0 %v3130_v39  ;;  %v356_v38 = vadd.s32 %v3610_v18, %v291_v47  ;;  %v357_v31 = vadd.s32 %v3610_v18, %v292_v33  ;;  %v3926_v56 = vld [vmem:[%s3581_s8 + $0x98] sm:$0xff] }
  0xd8   : > { %vm1110_vm13 = vmpackc.low %vm1061_vm12, %vm1060_vm11  ;;  %vm1062_vm14 = vcmp.ge.u32.totalorder %v998_v49, 429496729  ;;  %2321 = vmatprep.subr.bf16.mxu1 %v3132_v46  ;;  %v358_v54 = vadd.s32 %v3610_v18, %v293_v51  ;;  %v359_v55 = vadd.s32 %v3610_v18, %v294_v52  ;;  %v3134_v50 = vcombine.high %v3898_v44, %v3898_v44 }
  0xd9   : > { %v1142_v58 = vsel %vm1110_vm13, %v238_v48, 0  ;;  %vm1063_vm15 = vcmp.ge.u32.totalorder %v999_v15, 429496729  ;;  %v422_v59 = vadd.s32 %v3601_v13, %v356_v38  ;;  %v423_v61 = vadd.s32 %v3601_v13, %v357_v31 }
  0xda   : > { %v3061_v63 = vcombine.low %v1142_v58, %v1142_v58  ;;  %v3062_v1 = vcombine.high %v1142_v58, %v1142_v58  ;;  %vm1111_vm0 = vmpackc.low %vm1063_vm15, %vm1062_vm14  ;;  %v424_v4 = vadd.s32 %v3601_v13, %v358_v54  ;;  %v425_v7 = vadd.s32 %v3601_v13, %v359_v55 }
  0xdb   : > { %v1143_v6 = vsel %vm1111_vm0, %v239_v53, 0  ;;  %v488_v10 = vadd.s32 %v3621_v27, %v422_v59  ;;  %v489_v17 = vadd.s32 %v3621_v27, %v423_v61  ;;  %v3135_v19 = vcombine.low %v3926_v56, %v3926_v56 }
  0xdc   : > { %2233 = vmatprep.mubr.bf16.mxu0 %v3062_v1  ;;  %v3063_v21 = vcombine.low %v1143_v6, %v1143_v6  ;;  %v3064_v23 = vcombine.high %v1143_v6, %v1143_v6  ;;  %v490_v16 = vadd.s32 %v3621_v27, %v424_v4  ;;  %v491_v5 = vadd.s32 %v3621_v27, %v425_v7 }
  0xdd   : > { %2234 = vmatmul.mubr.bf16.vlgmr.msra.gmra.mrb[28].mxu0 %v3061_v63  ;;  %v552_v24 = vshrl.u32 %v488_v10, 16  ;;  %v553_v25 = vshrl.u32 %v489_v17, 16  ;;  %v3136_v26 = vcombine.high %v3926_v56, %v3926_v56  ;;  %v295_v62 = vadd.s32 4608, %v3597_v11 }
  0xde   : > { %2273 = vmatprep.mubr.bf16.mxu1 %v3064_v23  ;;  %2282 = vmatpush1.bf16.xpose.msra.mxu0 %v3129_v60  ;;  %v554_v28 = vshrl.u32 %v490_v16, 16  ;;  %v555_v29 = vshrl.u32 %v491_v5, 16  ;;  %v296_v30 = vadd.s32 4736, %v3597_v11  ;;  %v297_v34 = vadd.s32 4864, %v3597_v11 }
  0xdf   : > { %2274 = vmatmul.mubr.bf16.vlgmr.msra.gmra.mrb[28].mxu1 %v3063_v21  ;;  %v616_v0 = vxor.u32 %v552_v24, %v488_v10  ;;  %v617_v22 = vxor.u32 %v553_v25, %v489_v17  ;;  %2361 = vmatprep.subr.bf16.mxu0 %v3134_v50  ;;  %v360_v35 = vadd.s32 %v3610_v18, %v295_v62  ;;  %v298_v37 = vadd.s32 4992, %v3597_v11 }
  0xe0   : > { %2322 = vmatpush1.bf16.xpose.msra.mxu1 %v3131_v41  ;;  %v618_v45 = vxor.u32 %v554_v28, %v490_v16  ;;  %v619_v60 = vxor.u32 %v555_v29, %v491_v5  ;;  %v361_v39 = vadd.s32 %v3610_v18, %v296_v30  ;;  %v362_v36 = vadd.s32 %v3610_v18, %v297_v34  ;;  %v240_v28 = vld [vmem:[%s3575_s30 + $0x80] sm:$0xff] }
  0xe1   : > { %v680_v40 = vmul.u32 2246822507, %v616_v0  ;;  %v681_v8 = vmul.u32 2246822507, %v617_v22  ;;  %2401 = vmatprep.subr.bf16.mxu1 %v3136_v26  ;;  %v426_v12 = vadd.s32 %v3601_v13, %v360_v35  ;;  %v363_v9 = vadd.s32 %v3610_v18, %v298_v37  ;;  %v3964_v22 = vld [vmem:[%s3581_s8 + $0xa0] sm:$0xff]  ;;  %v241_v35 = vld [vmem:[%s3575_s30 + $0x88] sm:$0xff] }
  0xe2   : > { %v682_v3 = vmul.u32 2246822507, %v618_v45  ;;  %v683_v57 = vmul.u32 2246822507, %v619_v60  ;;  %v427_v43 = vadd.s32 %v3601_v13, %v361_v39  ;;  %v428_v2 = vadd.s32 %v3601_v13, %v362_v36 }
  0xe3   : > { %v744_v14 = vshrl.u32 %v680_v40, 13  ;;  %v745_v41 = vshrl.u32 %v681_v8, 13  ;;  %v492_v46 = vadd.s32 %v3621_v27, %v426_v12  ;;  %v429_v20 = vadd.s32 %v3601_v13, %v363_v9  ;;  %v3970_v9 = vld [vmem:[%s3581_s8 + $0xa8] sm:$0xff] }
  0xe4   : > { %v746_v32 = vshrl.u32 %v682_v3, 13  ;;  %v747_v47 = vshrl.u32 %v683_v57, 13  ;;  %v493_v33 = vadd.s32 %v3621_v27, %v427_v43  ;;  %v494_v48 = vadd.s32 %v3621_v27, %v428_v2 }
  0xe5   : > { %v808_v49 = vxor.u32 %v744_v14, %v680_v40  ;;  %v809_v51 = vxor.u32 %v745_v41, %v681_v8  ;;  %v556_v52 = vshrl.u32 %v492_v46, 16  ;;  %v495_v15 = vadd.s32 %v3621_v27, %v429_v20 }
  0xe6   : > { %v810_v38 = vxor.u32 %v746_v32, %v682_v3  ;;  %v811_v31 = vxor.u32 %v747_v47, %v683_v57  ;;  %v557_v53 = vshrl.u32 %v493_v33, 16  ;;  %v558_v54 = vshrl.u32 %v494_v48, 16 }
  0xe7   : > { %v872_v55 = vmul.u32 3266489909, %v808_v49  ;;  %v873_v50 = vmul.u32 3266489909, %v809_v51  ;;  %v620_v58 = vxor.u32 %v556_v52, %v492_v46  ;;  %v559_v59 = vshrl.u32 %v495_v15, 16 }
  0xe8   : > { %v874_v61 = vmul.u32 3266489909, %v810_v38  ;;  %v875_v63 = vmul.u32 3266489909, %v811_v31  ;;  %v621_v1 = vxor.u32 %v557_v53, %v493_v33  ;;  %v622_v4 = vxor.u32 %v558_v54, %v494_v48 }
  0xe9   : > { %v936_v7 = vshrl.u32 %v872_v55, 16  ;;  %v937_v6 = vshrl.u32 %v873_v50, 16  ;;  %v684_v10 = vmul.u32 2246822507, %v620_v58  ;;  %v623_v17 = vxor.u32 %v559_v59, %v495_v15 }
  0xea   : > { %v938_v21 = vshrl.u32 %v874_v61, 16  ;;  %v939_v23 = vshrl.u32 %v875_v63, 16  ;;  %v685_v16 = vmul.u32 2246822507, %v621_v1  ;;  %v686_v5 = vmul.u32 2246822507, %v622_v4 }
  0xeb   : > { %v1000_v24 = vxor.u32 %v936_v7, %v872_v55  ;;  %v1001_v25 = vxor.u32 %v937_v6, %v873_v50  ;;  %v748_v26 = vshrl.u32 %v684_v10, 13  ;;  %v687_v62 = vmul.u32 2246822507, %v623_v17  ;;  %v3985_v55 = vld [vmem:[%s3581_s8 + $0xb0] sm:$0xff]  ;;  %v243_v1 = vld [vmem:[%s3575_s30 + $0x98] sm:$0xff] }
  0xec   : > { %v1002_v29 = vxor.u32 %v938_v21, %v874_v61  ;;  %v1003_v30 = vxor.u32 %v939_v23, %v875_v63  ;;  %v749_v34 = vshrl.u32 %v685_v16, 13  ;;  %v750_v0 = vshrl.u32 %v686_v5, 13  ;;  %v242_v50 = vld [vmem:[%s3575_s30 + $0x90] sm:$0xff] }
  0xed   : > { %vm1064_vm1 = vcmp.ge.u32.totalorder %v1000_v24, 429496729  ;;  %vm1065_vm2 = vcmp.ge.u32.totalorder %v1001_v25, 429496729  ;;  %v812_v37 = vxor.u32 %v748_v26, %v684_v10  ;;  %v751_v45 = vshrl.u32 %v687_v62, 13 }
  0xee   : > { %vm1112_vm3 = vmpackc.low %vm1065_vm2, %vm1064_vm1  ;;  %vm1066_vm4 = vcmp.ge.u32.totalorder %v1002_v29, 429496729  ;;  %vm1067_vm5 = vcmp.ge.u32.totalorder %v1003_v30, 429496729  ;;  %v813_v60 = vxor.u32 %v749_v34, %v685_v16  ;;  %v814_v39 = vxor.u32 %v750_v0, %v686_v5  ;;  %v4005_v5 = vld [vmem:[%s3581_s8 + $0xb8] sm:$0xff] }
  0xef   : > { %v1144_v36 = vsel %vm1112_vm3, %v240_v28, 0  ;;  %vm1113_vm6 = vmpackc.low %vm1067_vm5, %vm1066_vm4  ;;  %v876_v40 = vmul.u32 3266489909, %v812_v37  ;;  %v815_v8 = vxor.u32 %v751_v45, %v687_v62  ;;  %v3137_v12 = vcombine.low %v3964_v22, %v3964_v22 }
  0xf0   : > { %v3065_v3 = vcombine.low %v1144_v36, %v1144_v36  ;;  %v3066_v57 = vcombine.high %v1144_v36, %v1144_v36  ;;  %v1145_v43 = vsel %vm1113_vm6, %v241_v35, 0  ;;  %v877_v2 = vmul.u32 3266489909, %v813_v60 }
  0xf1   : > { %v3067_v14 = vcombine.low %v1145_v43, %v1145_v43  ;;  %v3068_v41 = vcombine.high %v1145_v43, %v1145_v43  ;;  %v940_v46 = vshrl.u32 %v876_v40, 16  ;;  %v878_v20 = vmul.u32 3266489909, %v814_v39 }
  0xf2   : > { %2313 = vmatprep.mubr.bf16.mxu0 %v3066_v57  ;;  %v941_v32 = vshrl.u32 %v877_v2, 16  ;;  %v879_v47 = vmul.u32 3266489909, %v815_v8  ;;  %v3138_v33 = vcombine.high %v3964_v22, %v3964_v22  ;;  %v3139_v48 = vcombine.low %v3970_v9, %v3970_v9 }
  0xf3   : > { %2353 = vmatprep.mubr.bf16.mxu1 %v3068_v41  ;;  %2314 = vmatmul.mubr.bf16.vlgmr.msra.gmra.mrb[32].mxu0 %v3065_v3  ;;  %v1004_v49 = vxor.u32 %v940_v46, %v876_v40  ;;  %v942_v51 = vshrl.u32 %v878_v20, 16  ;;  %v3140_v52 = vcombine.high %v3970_v9, %v3970_v9  ;;  %v299_v15 = vadd.s32 5120, %v3597_v11 }
  0xf4   : > { %2354 = vmatmul.mubr.bf16.vlgmr.msra.gmra.mrb[32].mxu1 %v3067_v14  ;;  %2362 = vmatpush1.bf16.xpose.msra.mxu0 %v3133_v42  ;;  %v1005_v38 = vxor.u32 %v941_v32, %v877_v2  ;;  %v943_v31 = vshrl.u32 %v879_v47, 16  ;;  %v300_v53 = vadd.s32 5248, %v3597_v11  ;;  %v301_v54 = vadd.s32 5376, %v3597_v11 }
  0xf5   : > { %2402 = vmatpush1.bf16.xpose.msra.mxu1 %v3135_v19  ;;  %vm1068_vm7 = vcmp.ge.u32.totalorder %v1004_v49, 429496729  ;;  %v1006_v58 = vxor.u32 %v942_v51, %v878_v20  ;;  %2441 = vmatprep.subr.bf16.mxu0 %v3138_v33  ;;  %v364_v44 = vadd.s32 %v3610_v18, %v299_v15  ;;  %v302_v42 = vadd.s32 5504, %v3597_v11 }
  0xf6   : > { %vm1069_vm8 = vcmp.ge.u32.totalorder %v1005_v38, 429496729  ;;  %v1007_v59 = vxor.u32 %v943_v31, %v879_v47  ;;  %2481 = vmatprep.subr.bf16.mxu1 %v3140_v52  ;;  %v365_v61 = vadd.s32 %v3610_v18, %v300_v53  ;;  %v366_v63 = vadd.s32 %v3610_v18, %v301_v54 }
  0xf7   : > { %vm1114_vm9 = vmpackc.low %vm1069_vm8, %vm1068_vm7  ;;  %vm1070_vm10 = vcmp.ge.u32.totalorder %v1006_v58, 429496729  ;;  %v430_v56 = vadd.s32 %v3601_v13, %v364_v44  ;;  %v367_v19 = vadd.s32 %v3610_v18, %v302_v42  ;;  %v3141_v4 = vcombine.low %v3985_v55, %v3985_v55 }
  0xf8   : > { %v1146_v7 = vsel %vm1114_vm9, %v242_v50, 0  ;;  %vm1071_vm11 = vcmp.ge.u32.totalorder %v1007_v59, 429496729  ;;  %v431_v6 = vadd.s32 %v3601_v13, %v365_v61  ;;  %v432_v10 = vadd.s32 %v3601_v13, %v366_v63 }
  0xf9   : > { %v3069_v17 = vcombine.low %v1146_v7, %v1146_v7  ;;  %v3070_v21 = vcombine.high %v1146_v7, %v1146_v7  ;;  %vm1115_vm12 = vmpackc.low %vm1071_vm11, %vm1070_vm10  ;;  %v496_v23 = vadd.s32 %v3621_v27, %v430_v56  ;;  %v433_v16 = vadd.s32 %v3601_v13, %v367_v19 }
  0xfa   : > { %v1147_v24 = vsel %vm1115_vm12, %v243_v1, 0  ;;  %v497_v25 = vadd.s32 %v3621_v27, %v431_v6  ;;  %v498_v26 = vadd.s32 %v3621_v27, %v432_v10  ;;  %v3142_v62 = vcombine.high %v3985_v55, %v3985_v55 }
  0xfb   : > { %2393 = vmatprep.mubr.bf16.mxu0 %v3070_v21  ;;  %v3071_v28 = vcombine.low %v1147_v24, %v1147_v24  ;;  %v3072_v29 = vcombine.high %v1147_v24, %v1147_v24  ;;  %v560_v30 = vshrl.u32 %v496_v23, 16  ;;  %v499_v34 = vadd.s32 %v3621_v27, %v433_v16 }
  0xfc   : > { %2394 = vmatmul.mubr.bf16.vlgmr.msra.gmra.mrb[36].mxu0 %v3069_v17  ;;  %v561_v0 = vshrl.u32 %v497_v25, 16  ;;  %v562_v35 = vshrl.u32 %v498_v26, 16  ;;  %v3143_v37 = vcombine.low %v4005_v5, %v4005_v5  ;;  %v3144_v45 = vcombine.high %v4005_v5, %v4005_v5 }
  0xfd   : > { %2433 = vmatprep.mubr.bf16.mxu1 %v3072_v29  ;;  %2442 = vmatpush1.bf16.xpose.msra.mxu0 %v3137_v12  ;;  %v624_v60 = vxor.u32 %v560_v30, %v496_v23  ;;  %v563_v39 = vshrl.u32 %v499_v34, 16  ;;  %v303_v36 = vadd.s32 5632, %v3597_v11  ;;  %v304_v40 = vadd.s32 5760, %v3597_v11 }
  0xfe   : > { %2434 = vmatmul.mubr.bf16.vlgmr.msra.gmra.mrb[36].mxu1 %v3071_v28  ;;  %v625_v8 = vxor.u32 %v561_v0, %v497_v25  ;;  %v626_v3 = vxor.u32 %v562_v35, %v498_v26  ;;  %2521 = vmatprep.subr.bf16.mxu0 %v3142_v62  ;;  %v305_v57 = vadd.s32 5888, %v3597_v11  ;;  %v306_v43 = vadd.s32 6016, %v3597_v11 }
  0xff   : > { %2482 = vmatpush1.bf16.xpose.msra.mxu1 %v3139_v48  ;;  %v688_v22 = vmul.u32 2246822507, %v624_v60  ;;  %v627_v12 = vxor.u32 %v563_v39, %v499_v34  ;;  %v368_v2 = vadd.s32 %v3610_v18, %v303_v36  ;;  %v369_v14 = vadd.s32 %v3610_v18, %v304_v40  ;;  %v4039_v60 = vld [vmem:[%s3581_s8 + $0xc0] sm:$0xff]  ;;  %v245_v36 = vld [vmem:[%s3575_s30 + $0xa8] sm:$0xff] }
 0x100   : > { %v689_v41 = vmul.u32 2246822507, %v625_v8  ;;  %v690_v46 = vmul.u32 2246822507, %v626_v3  ;;  %2561 = vmatprep.subr.bf16.mxu1 %v3144_v45  ;;  %v370_v20 = vadd.s32 %v3610_v18, %v305_v57  ;;  %v371_v32 = vadd.s32 %v3610_v18, %v306_v43  ;;  %v244_v39 = vld [vmem:[%s3575_s30 + $0xa0] sm:$0xff] }
 0x101   : > { %v752_v47 = vshrl.u32 %v688_v22, 13  ;;  %v691_v33 = vmul.u32 2246822507, %v627_v12  ;;  %v434_v49 = vadd.s32 %v3601_v13, %v368_v2  ;;  %v435_v9 = vadd.s32 %v3601_v13, %v369_v14 }
 0x102   : > { %v753_v48 = vshrl.u32 %v689_v41, 13  ;;  %v754_v51 = vshrl.u32 %v690_v46, 13  ;;  %v436_v52 = vadd.s32 %v3601_v13, %v370_v20  ;;  %v437_v15 = vadd.s32 %v3601_v13, %v371_v32  ;;  %v4048_v32 = vld [vmem:[%s3581_s8 + $0xc8] sm:$0xff] }
 0x103   : > { %v816_v38 = vxor.u32 %v752_v47, %v688_v22  ;;  %v755_v31 = vshrl.u32 %v691_v33, 13  ;;  %v500_v53 = vadd.s32 %v3621_v27, %v434_v49  ;;  %v501_v54 = vadd.s32 %v3621_v27, %v435_v9 }
 0x104   : > { %v817_v50 = vxor.u32 %v753_v48, %v689_v41  ;;  %v818_v58 = vxor.u32 %v754_v51, %v690_v46  ;;  %v502_v44 = vadd.s32 %v3621_v27, %v436_v52  ;;  %v503_v42 = vadd.s32 %v3621_v27, %v437_v15 }
 0x105   : > { %v880_v59 = vmul.u32 3266489909, %v816_v38  ;;  %v819_v61 = vxor.u32 %v755_v31, %v691_v33  ;;  %v564_v63 = vshrl.u32 %v500_v53, 16  ;;  %v565_v1 = vshrl.u32 %v501_v54, 16 }
 0x106   : > { %v881_v56 = vmul.u32 3266489909, %v817_v50  ;;  %v882_v19 = vmul.u32 3266489909, %v818_v58  ;;  %v566_v7 = vshrl.u32 %v502_v44, 16  ;;  %v567_v6 = vshrl.u32 %v503_v42, 16 }
 0x107   : > { %v944_v10 = vshrl.u32 %v880_v59, 16  ;;  %v883_v17 = vmul.u32 3266489909, %v819_v61  ;;  %v628_v21 = vxor.u32 %v564_v63, %v500_v53  ;;  %v629_v23 = vxor.u32 %v565_v1, %v501_v54 }
 0x108   : > { %v945_v16 = vshrl.u32 %v881_v56, 16  ;;  %v946_v24 = vshrl.u32 %v882_v19, 16  ;;  %v630_v25 = vxor.u32 %v566_v7, %v502_v44  ;;  %v631_v26 = vxor.u32 %v567_v6, %v503_v42  ;;  %v246_v6 = vld [vmem:[%s3575_s30 + $0xb0] sm:$0xff] }
 0x109   : > { %v1008_v62 = vxor.u32 %v944_v10, %v880_v59  ;;  %v947_v28 = vshrl.u32 %v883_v17, 16  ;;  %v692_v29 = vmul.u32 2246822507, %v628_v21  ;;  %v693_v30 = vmul.u32 2246822507, %v629_v23  ;;  %v247_v21 = vld [vmem:[%s3575_s30 + $0xb8] sm:$0xff] }
 0x10a   : > { %v1009_v34 = vxor.u32 %v945_v16, %v881_v56  ;;  %v1010_v0 = vxor.u32 %v946_v24, %v882_v19  ;;  %v694_v35 = vmul.u32 2246822507, %v630_v25  ;;  %v695_v45 = vmul.u32 2246822507, %v631_v26 }
 0x10b   : > { %vm1072_vm13 = vcmp.ge.u32.totalorder %v1008_v62, 429496729  ;;  %v1011_v40 = vxor.u32 %v947_v28, %v883_v17  ;;  %v756_v8 = vshrl.u32 %v692_v29, 13  ;;  %v757_v3 = vshrl.u32 %v693_v30, 13  ;;  %v4069_v17 = vld [vmem:[%s3581_s8 + $0xd0] sm:$0xff] }
 0x10c   : > { %vm1073_vm14 = vcmp.ge.u32.totalorder %v1009_v34, 429496729  ;;  %vm1074_vm15 = vcmp.ge.u32.totalorder %v1010_v0, 429496729  ;;  %v758_v57 = vshrl.u32 %v694_v35, 13  ;;  %v759_v43 = vshrl.u32 %v695_v45, 13 }
 0x10d   : > { %vm1116_vm0 = vmpackc.low %vm1073_vm14, %vm1072_vm13  ;;  %vm1075_vm1 = vcmp.ge.u32.totalorder %v1011_v40, 429496729  ;;  %v820_v22 = vxor.u32 %v756_v8, %v692_v29  ;;  %v821_v12 = vxor.u32 %v757_v3, %v693_v30  ;;  %v3145_v2 = vcombine.low %v4039_v60, %v4039_v60  ;;  %v4082_v29 = vld [vmem:[%s3581_s8 + $0xd8] sm:$0xff] }
 0x10e   : > { %v1148_v14 = vsel %vm1116_vm0, %v244_v39, 0  ;;  %vm1117_vm2 = vmpackc.low %vm1075_vm1, %vm1074_vm15  ;;  %v822_v41 = vxor.u32 %v758_v57, %v694_v35  ;;  %v823_v46 = vxor.u32 %v759_v43, %v695_v45  ;;  %v3146_v20 = vcombine.high %v4039_v60, %v4039_v60 }
 0x10f   : > { %v3073_v47 = vcombine.low %v1148_v14, %v1148_v14  ;;  %v3074_v33 = vcombine.high %v1148_v14, %v1148_v14  ;;  %v1149_v49 = vsel %vm1117_vm2, %v245_v36, 0  ;;  %v884_v9 = vmul.u32 3266489909, %v820_v22 }
 0x110   : > { %v3075_v48 = vcombine.low %v1149_v49, %v1149_v49  ;;  %v3076_v51 = vcombine.high %v1149_v49, %v1149_v49  ;;  %v885_v52 = vmul.u32 3266489909, %v821_v12  ;;  %v886_v15 = vmul.u32 3266489909, %v822_v41 }
 0x111   : > { %2473 = vmatprep.mubr.bf16.mxu0 %v3074_v33  ;;  %v948_v38 = vshrl.u32 %v884_v9, 16  ;;  %v887_v31 = vmul.u32 3266489909, %v823_v46  ;;  %v3147_v53 = vcombine.low %v4048_v32, %v4048_v32  ;;  %v3148_v54 = vcombine.high %v4048_v32, %v4048_v32 }
 0x112   : > { %2513 = vmatprep.mubr.bf16.mxu1 %v3076_v51  ;;  %2474 = vmatmul.mubr.bf16.vlgmr.msra.gmra.mrb[40].mxu0 %v3073_v47  ;;  %v949_v50 = vshrl.u32 %v885_v52, 16  ;;  %v950_v58 = vshrl.u32 %v886_v15, 16  ;;  %v307_v44 = vadd.s32 6144, %v3597_v11  ;;  %v308_v42 = vadd.s32 6272, %v3597_v11 }
 0x113   : > { %2514 = vmatmul.mubr.bf16.vlgmr.msra.gmra.mrb[40].mxu1 %v3075_v48  ;;  %2522 = vmatpush1.bf16.xpose.msra.mxu0 %v3141_v4  ;;  %v1012_v59 = vxor.u32 %v948_v38, %v884_v9  ;;  %v951_v61 = vshrl.u32 %v887_v31, 16  ;;  %v309_v63 = vadd.s32 6400, %v3597_v11  ;;  %v310_v1 = vadd.s32 6528, %v3597_v11 }
 0x114   : > { %2562 = vmatpush1.bf16.xpose.msra.mxu1 %v3143_v37  ;;  %v1013_v56 = vxor.u32 %v949_v50, %v885_v52  ;;  %v1014_v19 = vxor.u32 %v950_v58, %v886_v15  ;;  %2601 = vmatprep.subr.bf16.mxu0 %v3146_v20  ;;  %v372_v7 = vadd.s32 %v3610_v18, %v307_v44  ;;  %v311_v24 = vadd.s32 6656, %v3597_v11 }
 0x115   : > { %vm1076_vm3 = vcmp.ge.u32.totalorder %v1012_v59, 429496729  ;;  %v1015_v55 = vxor.u32 %v951_v61, %v887_v31  ;;  %2641 = vmatprep.subr.bf16.mxu1 %v3148_v54  ;;  %v373_v4 = vadd.s32 %v3610_v18, %v308_v42  ;;  %v374_v10 = vadd.s32 %v3610_v18, %v309_v63 }
 0x116   : > { %vm1077_vm4 = vcmp.ge.u32.totalorder %v1013_v56, 429496729  ;;  %vm1078_vm5 = vcmp.ge.u32.totalorder %v1014_v19, 429496729  ;;  %v438_v5 = vadd.s32 %v3601_v13, %v372_v7  ;;  %v375_v37 = vadd.s32 %v3610_v18, %v310_v1 }
 0x117   : > { %vm1118_vm6 = vmpackc.low %vm1077_vm4, %vm1076_vm3  ;;  %vm1079_vm7 = vcmp.ge.u32.totalorder %v1015_v55, 429496729  ;;  %v439_v23 = vadd.s32 %v3601_v13, %v373_v4  ;;  %v440_v16 = vadd.s32 %v3601_v13, %v374_v10  ;;  %v3150_v28 = vcombine.high %v4069_v17, %v4069_v17 }
 0x118   : > { %v1150_v25 = vsel %vm1118_vm6, %v246_v6, 0  ;;  %vm1119_vm8 = vmpackc.low %vm1079_vm7, %vm1078_vm5  ;;  %v504_v26 = vadd.s32 %v3621_v27, %v438_v5  ;;  %v441_v62 = vadd.s32 %v3601_v13, %v375_v37  ;;  %v3149_v57 = vcombine.low %v4069_v17, %v4069_v17  ;;  %v251_v17 = vld [vmem:[%s3575_s30 + $0xd8] sm:$0xff] }
 0x119   : > { %v3077_v30 = vcombine.low %v1150_v25, %v1150_v25  ;;  %v3078_v34 = vcombine.high %v1150_v25, %v1150_v25  ;;  %v1151_v0 = vsel %vm1119_vm8, %v247_v21, 0  ;;  %v505_v35 = vadd.s32 %v3621_v27, %v439_v23 }
 0x11a   : > { %v3079_v45 = vcombine.low %v1151_v0, %v1151_v0  ;;  %v3080_v39 = vcombine.high %v1151_v0, %v1151_v0  ;;  %v568_v36 = vshrl.u32 %v504_v26, 16  ;;  %v506_v40 = vadd.s32 %v3621_v27, %v440_v16 }
 0x11b   : > { %2553 = vmatprep.mubr.bf16.mxu0 %v3078_v34  ;;  %v569_v8 = vshrl.u32 %v505_v35, 16  ;;  %v507_v3 = vadd.s32 %v3621_v27, %v441_v62  ;;  %v3152_v43 = vcombine.high %v4082_v29, %v4082_v29  ;;  %v312_v14 = vadd.s32 6784, %v3597_v11 }
 0x11c   : > { %2593 = vmatprep.mubr.bf16.mxu1 %v3080_v39  ;;  %2554 = vmatmul.mubr.bf16.vlgmr.msra.gmra.mrb[44].mxu0 %v3077_v30  ;;  %v632_v22 = vxor.u32 %v568_v36, %v504_v26  ;;  %v570_v12 = vshrl.u32 %v506_v40, 16  ;;  %v376_v41 = vadd.s32 %v3610_v18, %v311_v24  ;;  %v313_v47 = vadd.s32 6912, %v3597_v11 }
 0x11d   : > { %2594 = vmatmul.mubr.bf16.vlgmr.msra.gmra.mrb[44].mxu1 %v3079_v45  ;;  %2602 = vmatpush1.bf16.xpose.msra.mxu0 %v3145_v2  ;;  %v633_v46 = vxor.u32 %v569_v8, %v505_v35  ;;  %v571_v20 = vshrl.u32 %v507_v3, 16  ;;  %v314_v33 = vadd.s32 7040, %v3597_v11  ;;  %v377_v48 = vadd.s32 %v3610_v18, %v312_v14 }
 0x11e   : > { %2642 = vmatpush1.bf16.xpose.msra.mxu1 %v3147_v53  ;;  %v696_v49 = vmul.u32 2246822507, %v632_v22  ;;  %v634_v9 = vxor.u32 %v570_v12, %v506_v40  ;;  %2681 = vmatprep.subr.bf16.mxu0 %v3150_v28  ;;  %v442_v51 = vadd.s32 %v3601_v13, %v376_v41  ;;  %v378_v2 = vadd.s32 %v3610_v18, %v313_v47  ;;  %v249_v47 = vld [vmem:[%s3575_s30 + $0xc8] sm:$0xff] }
 0x11f   : > { %v697_v52 = vmul.u32 2246822507, %v633_v46  ;;  %v635_v60 = vxor.u32 %v571_v20, %v507_v3  ;;  %2721 = vmatprep.subr.bf16.mxu1 %v3152_v43  ;;  %v379_v15 = vadd.s32 %v3610_v18, %v314_v33  ;;  %v443_v54 = vadd.s32 %v3601_v13, %v377_v48  ;;  %v248_v43 = vld [vmem:[%s3575_s30 + $0xc0] sm:$0xff] }
 0x120   : > { %v760_v38 = vshrl.u32 %v696_v49, 13  ;;  %v698_v31 = vmul.u32 2246822507, %v634_v9  ;;  %v508_v32 = vadd.s32 %v3621_v27, %v442_v51  ;;  %v444_v58 = vadd.s32 %v3601_v13, %v378_v2  ;;  %v4117_v48 = vld [vmem:[%s3581_s8 + $0xe0] sm:$0xff] }
 0x121   : > { %v761_v53 = vshrl.u32 %v697_v52, 13  ;;  %v699_v50 = vmul.u32 2246822507, %v635_v60  ;;  %v445_v44 = vadd.s32 %v3601_v13, %v379_v15  ;;  %v509_v61 = vadd.s32 %v3621_v27, %v443_v54  ;;  %v4120_v54 = vld [vmem:[%s3581_s8 + $0xe8] sm:$0xff] }
 0x122   : > { %v824_v42 = vxor.u32 %v760_v38, %v696_v49  ;;  %v762_v59 = vshrl.u32 %v698_v31, 13  ;;  %v572_v63 = vshrl.u32 %v508_v32, 16  ;;  %v510_v19 = vadd.s32 %v3621_v27, %v444_v58 }
 0x123   : > { %v825_v1 = vxor.u32 %v761_v53, %v697_v52  ;;  %v763_v56 = vshrl.u32 %v699_v50, 13  ;;  %v511_v7 = vadd.s32 %v3621_v27, %v445_v44  ;;  %v573_v4 = vshrl.u32 %v509_v61, 16 }
 0x124   : > { %v888_v6 = vmul.u32 3266489909, %v824_v42  ;;  %v826_v55 = vxor.u32 %v762_v59, %v698_v31  ;;  %v636_v10 = vxor.u32 %v572_v63, %v508_v32  ;;  %v574_v37 = vshrl.u32 %v510_v19, 16 }
 0x125   : > { %v889_v21 = vmul.u32 3266489909, %v825_v1  ;;  %v827_v5 = vxor.u32 %v763_v56, %v699_v50  ;;  %v575_v23 = vshrl.u32 %v511_v7, 16  ;;  %v637_v25 = vxor.u32 %v573_v4, %v509_v61 }
 0x126   : > { %v952_v16 = vshrl.u32 %v888_v6, 16  ;;  %v890_v24 = vmul.u32 3266489909, %v826_v55  ;;  %v700_v26 = vmul.u32 2246822507, %v636_v10  ;;  %v638_v30 = vxor.u32 %v574_v37, %v510_v19  ;;  %v250_v55 = vld [vmem:[%s3575_s30 + $0xd0] sm:$0xff] }
 0x127   : > { %v953_v62 = vshrl.u32 %v889_v21, 16  ;;  %v891_v28 = vmul.u32 3266489909, %v827_v5  ;;  %v639_v34 = vxor.u32 %v575_v23, %v511_v7  ;;  %v701_v45 = vmul.u32 2246822507, %v637_v25  ;;  %v4137_v37 = vld [vmem:[%s3581_s8 + $0xf0] sm:$0xff] }
 0x128   : > { %v1016_v0 = vxor.u32 %v952_v16, %v888_v6  ;;  %v954_v35 = vshrl.u32 %v890_v24, 16  ;;  %v764_v39 = vshrl.u32 %v700_v26, 13  ;;  %v702_v8 = vmul.u32 2246822507, %v638_v30 }
 0x129   : > { %v1017_v36 = vxor.u32 %v953_v62, %v889_v21  ;;  %v955_v40 = vshrl.u32 %v891_v28, 16  ;;  %v703_v3 = vmul.u32 2246822507, %v639_v34  ;;  %v765_v12 = vshrl.u32 %v701_v45, 13  ;;  %v4152_v34 = vld [vmem:[%s3581_s8 + $0xf8] sm:$0xff] }
 0x12a   : > { %vm1080_vm9 = vcmp.ge.u32.totalorder %v1016_v0, 429496729  ;;  %v1018_v22 = vxor.u32 %v954_v35, %v890_v24  ;;  %v828_v14 = vxor.u32 %v764_v39, %v700_v26  ;;  %v766_v46 = vshrl.u32 %v702_v8, 13 }
 0x12b   : > { %vm1081_vm10 = vcmp.ge.u32.totalorder %v1017_v36, 429496729  ;;  %v1019_v41 = vxor.u32 %v955_v40, %v891_v28  ;;  %v767_v20 = vshrl.u32 %v703_v3, 13  ;;  %v3151_v33 = vcombine.low %v4082_v29, %v4082_v29 }
 0x12c   : > { %vm1120_vm11 = vmpackc.low %vm1081_vm10, %vm1080_vm9  ;;  %vm1082_vm12 = vcmp.ge.u32.totalorder %v1018_v22, 429496729  ;;  %v829_v49 = vxor.u32 %v765_v12, %v701_v45  ;;  %v892_v9 = vmul.u32 3266489909, %v828_v14  ;;  %v830_v52 = vxor.u32 %v766_v46, %v702_v8 }
 0x12d   : > { %v1152_v51 = vsel %vm1120_vm11, %v248_v43, 0  ;;  %vm1083_vm13 = vcmp.ge.u32.totalorder %v1019_v41, 429496729  ;;  %v831_v60 = vxor.u32 %v767_v20, %v703_v3  ;;  %v3154_v29 = vcombine.high %v4117_v48, %v4117_v48 }
 0x12e   : > { %v3081_v2 = vcombine.low %v1152_v51, %v1152_v51  ;;  %v3082_v15 = vcombine.high %v1152_v51, %v1152_v51  ;;  %vm1121_vm14 = vmpackc.low %vm1083_vm13, %vm1082_vm12  ;;  %v893_v38 = vmul.u32 3266489909, %v829_v49  ;;  %v956_v31 = vshrl.u32 %v892_v9, 16 }
 0x12f   : > { %v1153_v32 = vsel %vm1121_vm14, %v249_v47, 0  ;;  %v894_v53 = vmul.u32 3266489909, %v830_v52  ;;  %v895_v50 = vmul.u32 3266489909, %v831_v60  ;;  %v3153_v1 = vcombine.low %v4117_v48, %v4117_v48 }
 0x130   : > { %2633 = vmatprep.mubr.bf16.mxu0 %v3082_v15  ;;  %v3083_v58 = vcombine.low %v1153_v32, %v1153_v32  ;;  %v3084_v44 = vcombine.high %v1153_v32, %v1153_v32  ;;  %v957_v42 = vshrl.u32 %v893_v38, 16  ;;  %v1020_v59 = vxor.u32 %v956_v31, %v892_v9 }
 0x131   : > { %2634 = vmatmul.mubr.bf16.vlgmr.msra.gmra.mrb[48].mxu0 %v3081_v2  ;;  %v958_v61 = vshrl.u32 %v894_v53, 16  ;;  %v959_v63 = vshrl.u32 %v895_v50, 16  ;;  %v3156_v56 = vcombine.high %v4120_v54, %v4120_v54  ;;  %v315_v7 = vadd.s32 7168, %v3597_v11 }
 0x132   : > { %2673 = vmatprep.mubr.bf16.mxu1 %v3084_v44  ;;  %2682 = vmatpush1.bf16.xpose.msra.mxu0 %v3149_v57  ;;  %v1021_v19 = vxor.u32 %v957_v42, %v893_v38  ;;  %vm1084_vm15 = vcmp.ge.u32.totalorder %v1020_v59, 429496729  ;;  %v316_v6 = vadd.s32 7296, %v3597_v11  ;;  %v317_v21 = vadd.s32 7424, %v3597_v11 }
 0x133   : > { %2674 = vmatmul.mubr.bf16.vlgmr.msra.gmra.mrb[48].mxu1 %v3083_v58  ;;  %v1022_v4 = vxor.u32 %v958_v61, %v894_v53  ;;  %v1023_v10 = vxor.u32 %v959_v63, %v895_v50  ;;  %2761 = vmatprep.subr.bf16.mxu0 %v3154_v29  ;;  %v318_v5 = vadd.s32 7552, %v3597_v11  ;;  %v3155_v57 = vcombine.low %v4120_v54, %v4120_v54 }
 0x134   : > { %2722 = vmatpush1.bf16.xpose.msra.mxu1 %v3151_v33  ;;  %vm1085_vm0 = vcmp.ge.u32.totalorder %v1021_v19, 429496729  ;;  %v380_v23 = vadd.s32 %v3610_v18, %v315_v7  ;;  %v381_v16 = vadd.s32 %v3610_v18, %v316_v6  ;;  %v382_v24 = vadd.s32 %v3610_v18, %v317_v21 }
 0x135   : > { %vm1122_vm1 = vmpackc.low %vm1085_vm0, %vm1084_vm15  ;;  %vm1086_vm2 = vcmp.ge.u32.totalorder %v1022_v4, 429496729  ;;  %vm1087_vm3 = vcmp.ge.u32.totalorder %v1023_v10, 429496729  ;;  %2801 = vmatprep.subr.bf16.mxu1 %v3156_v56  ;;  %v383_v25 = vadd.s32 %v3610_v18, %v318_v5  ;;  %v3158_v30 = vcombine.high %v4137_v37, %v4137_v37 }
 0x136   : > { %v1154_v26 = vsel %vm1122_vm1, %v250_v55, 0  ;;  %vm1123_vm4 = vmpackc.low %vm1087_vm3, %vm1086_vm2  ;;  %v446_v62 = vadd.s32 %v3601_v13, %v380_v23  ;;  %v447_v28 = vadd.s32 %v3601_v13, %v381_v16  ;;  %v448_v39 = vadd.s32 %v3601_v13, %v382_v24 }
 0x137   : > { %v3085_v0 = vcombine.low %v1154_v26, %v1154_v26  ;;  %v3086_v35 = vcombine.high %v1154_v26, %v1154_v26  ;;  %v1155_v45 = vsel %vm1123_vm4, %v251_v17, 0  ;;  %v449_v43 = vadd.s32 %v3601_v13, %v383_v25 }
 0x138   : > { %v3087_v36 = vcombine.low %v1155_v45, %v1155_v45  ;;  %v3088_v40 = vcombine.high %v1155_v45, %v1155_v45  ;;  %v512_v8 = vadd.s32 %v3621_v27, %v446_v62  ;;  %v513_v3 = vadd.s32 %v3621_v27, %v447_v28 }
 0x139   : > { %2713 = vmatprep.mubr.bf16.mxu0 %v3086_v35  ;;  %v514_v22 = vadd.s32 %v3621_v27, %v448_v39  ;;  %v3160_v12 = vcombine.high %v4152_v34, %v4152_v34  ;;  %v319_v46 = vadd.s32 7680, %v3597_v11  ;;  %v320_v20 = vadd.s32 7808, %v3597_v11 }
 0x13a   : > { %2753 = vmatprep.mubr.bf16.mxu1 %v3088_v40  ;;  %2714 = vmatmul.mubr.bf16.vlgmr.msra.gmra.mrb[52].mxu0 %v3085_v0  ;;  %v576_v14 = vshrl.u32 %v512_v8, 16  ;;  %v577_v41 = vshrl.u32 %v513_v3, 16  ;;  %v515_v47 = vadd.s32 %v3621_v27, %v449_v43  ;;  %v321_v49 = vadd.s32 7936, %v3597_v11 }
 0x13b   : > { %2754 = vmatmul.mubr.bf16.vlgmr.msra.gmra.mrb[52].mxu1 %v3087_v36  ;;  %2762 = vmatpush1.bf16.xpose.msra.mxu0 %v3153_v1  ;;  %v578_v33 = vshrl.u32 %v514_v22, 16  ;;  %v322_v9 = vadd.s32 8064, %v3597_v11  ;;  %v384_v52 = vadd.s32 %v3610_v18, %v319_v46  ;;  %v385_v15 = vadd.s32 %v3610_v18, %v320_v20 }
 0x13c   : > { %2802 = vmatpush1.bf16.xpose.msra.mxu1 %v3155_v57  ;;  %v640_v48 = vxor.u32 %v576_v14, %v512_v8  ;;  %v641_v51 = vxor.u32 %v577_v41, %v513_v3  ;;  %2841 = vmatprep.subr.bf16.mxu0 %v3158_v30  ;;  %v579_v60 = vshrl.u32 %v515_v47, 16  ;;  %v386_v38 = vadd.s32 %v3610_v18, %v321_v49  ;;  %v252_v3 = vld [vmem:[%s3575_s30 + $0xe0] sm:$0xff] }
 0x13d   : > { %v642_v2 = vxor.u32 %v578_v33, %v514_v22  ;;  %2881 = vmatprep.subr.bf16.mxu1 %v3160_v12  ;;  %v450_v32 = vadd.s32 %v3601_v13, %v384_v52  ;;  %v387_v53 = vadd.s32 %v3610_v18, %v322_v9  ;;  %v451_v29 = vadd.s32 %v3601_v13, %v385_v15  ;;  %v253_v9 = vld [vmem:[%s3575_s30 + $0xe8] sm:$0xff] }
 0x13e   : > { %v704_v31 = vmul.u32 2246822507, %v640_v48  ;;  %v705_v54 = vmul.u32 2246822507, %v641_v51  ;;  %v643_v11 = vxor.u32 %v579_v60, %v515_v47  ;;  %v452_v58 = vadd.s32 %v3601_v13, %v386_v38 }
 0x13f   : > { %v706_v50 = vmul.u32 2246822507, %v642_v2  ;;  %v516_v59 = vadd.s32 %v3621_v27, %v450_v32  ;;  %v453_v61 = vadd.s32 %v3601_v13, %v387_v53  ;;  %v517_v56 = vadd.s32 %v3621_v27, %v451_v29 }
 0x140   : > { %v768_v44 = vshrl.u32 %v704_v31, 13  ;;  %v769_v42 = vshrl.u32 %v705_v54, 13  ;;  %v707_v63 = vmul.u32 2246822507, %v643_v11  ;;  %v518_v19 = vadd.s32 %v3621_v27, %v452_v58 }
 0x141   : > { %v770_v1 = vshrl.u32 %v706_v50, 13  ;;  %v580_v6 = vshrl.u32 %v516_v59, 16  ;;  %v519_v55 = vadd.s32 %v3621_v27, %v453_v61  ;;  %v581_v21 = vshrl.u32 %v517_v56, 16 }
 0x142   : > { %v832_v7 = vxor.u32 %v768_v44, %v704_v31  ;;  %v833_v18 = vxor.u32 %v769_v42, %v705_v54  ;;  %v771_v4 = vshrl.u32 %v707_v63, 13  ;;  %v582_v5 = vshrl.u32 %v518_v19, 16 }
 0x143   : > { %v834_v10 = vxor.u32 %v770_v1, %v706_v50  ;;  %v644_v23 = vxor.u32 %v580_v6, %v516_v59  ;;  %v583_v16 = vshrl.u32 %v519_v55, 16  ;;  %v645_v25 = vxor.u32 %v581_v21, %v517_v56 }
 0x144   : > { %v896_v17 = vmul.u32 3266489909, %v832_v7  ;;  %v897_v57 = vmul.u32 3266489909, %v833_v18  ;;  %v835_v13 = vxor.u32 %v771_v4, %v707_v63  ;;  %v646_v26 = vxor.u32 %v582_v5, %v518_v19  ;;  %v255_v5 = vld [vmem:[%s3575_s30 + $0xf8] sm:$0xff] }
 0x145   : > { %v898_v24 = vmul.u32 3266489909, %v834_v10  ;;  %v708_v30 = vmul.u32 2246822507, %v644_v23  ;;  %v647_v0 = vxor.u32 %v583_v16, %v519_v55  ;;  %v3157_v48 = vcombine.low %v4137_v37, %v4137_v37 }
 0x146   : > { %v960_v62 = vshrl.u32 %v896_v17, 16  ;;  %v961_v28 = vshrl.u32 %v897_v57, 16  ;;  %v899_v35 = vmul.u32 3266489909, %v835_v13  ;;  %v709_v27 = vmul.u32 2246822507, %v645_v25 }
 0x147   : > { %v962_v45 = vshrl.u32 %v898_v24, 16  ;;  %v772_v40 = vshrl.u32 %v708_v30, 13  ;;  %v710_v8 = vmul.u32 2246822507, %v646_v26  ;;  %v711_v14 = vmul.u32 2246822507, %v647_v0 }
 0x148   : > { %v1024_v39 = vxor.u32 %v960_v62, %v896_v17  ;;  %v1025_v36 = vxor.u32 %v961_v28, %v897_v57  ;;  %v963_v43 = vshrl.u32 %v899_v35, 16  ;;  %v773_v12 = vshrl.u32 %v709_v27, 13 }
 0x149   : > { %v1026_v22 = vxor.u32 %v962_v45, %v898_v24  ;;  %v836_v41 = vxor.u32 %v772_v40, %v708_v30  ;;  %v774_v46 = vshrl.u32 %v710_v8, 13  ;;  %v775_v33 = vshrl.u32 %v711_v14, 13 }
 0x14a   : > { %vm1088_vm5 = vcmp.ge.u32.totalorder %v1024_v39, 429496729  ;;  %vm1089_vm6 = vcmp.ge.u32.totalorder %v1025_v36, 429496729  ;;  %v1027_v20 = vxor.u32 %v963_v43, %v899_v35  ;;  %v837_v47 = vxor.u32 %v773_v12, %v709_v27 }
 0x14b   : > { %vm1124_vm7 = vmpackc.low %vm1089_vm6, %vm1088_vm5  ;;  %vm1090_vm8 = vcmp.ge.u32.totalorder %v1026_v22, 429496729  ;;  %v900_v51 = vmul.u32 3266489909, %v836_v41  ;;  %v838_v52 = vxor.u32 %v774_v46, %v710_v8  ;;  %v839_v31 = vxor.u32 %v775_v33, %v711_v14 }
 0x14c   : > { %v1156_v49 = vsel %vm1124_vm7, %v252_v3, 0  ;;  %vm1091_vm9 = vcmp.ge.u32.totalorder %v1027_v20, 429496729  ;;  %v901_v15 = vmul.u32 3266489909, %v837_v47  ;;  %v3159_v11 = vcombine.low %v4152_v34, %v4152_v34  ;;  %v254_v34 = vld [vmem:[%s3575_s30 + $0xf0] sm:$0xff] }
 0x14d   : > { %v3089_v60 = vcombine.low %v1156_v49, %v1156_v49  ;;  %v3090_v2 = vcombine.high %v1156_v49, %v1156_v49  ;;  %vm1125_vm10 = vmpackc.low %vm1091_vm9, %vm1090_vm8  ;;  %v964_v38 = vshrl.u32 %v900_v51, 16  ;;  %v902_v54 = vmul.u32 3266489909, %v838_v52 }
 0x14e   : > { %v1675_v32 = vpop.f32.mrb[0].mxu0  ;;  %v1157_v53 = vsel %vm1125_vm10, %v253_v9, 0  ;;  %v965_v50 = vshrl.u32 %v901_v15, 16  ;;  %v903_v59 = vmul.u32 3266489909, %v839_v31  ;;  %vm2922_vm1 = vcmask 64512  }
 0x14f   : > { %2793 = vmatprep.mubr.bf16.mxu0 %v3090_v2  ;;  %v1715_v29 = vpop.f32.mrb[0].mxu1  ;;  %v1677_v37 = vpop.f32.mrb[1].mxu0  ;;  %v3091_v58 = vcombine.low %v1157_v53, %v1157_v53  ;;  %v3092_v44 = vcombine.high %v1157_v53, %v1157_v53  ;;  %v1028_v42 = vxor.u32 %v964_v38, %v900_v51  ;;  %v966_v56 = vshrl.u32 %v902_v54, 16 }
 0x150   : > { %2794 = vmatmul.mubr.bf16.vlgmr.msra.gmra.mrb[56].mxu0 %v3089_v60  ;;  %v1717_v61 = vpop.f32.mrb[1].mxu1  ;;  %v1678_v63 = vpop.f32.mrb[2].mxu0  ;;  %v1029_v1 = vxor.u32 %v965_v50, %v901_v15  ;;  %v1716_v19 = vadd.f32 %v1715_v29, %v1675_v32  ;;  %v967_v6 = vshrl.u32 %v903_v59, 16 }
 0x151   : > { %2842 = vmatpush1.bf16.xpose.msra.mxu0 %v3157_v48  ;;  %v1718_v7 = vpop.f32.mrb[2].mxu1  ;;  %v1679_v18 = vpop.f32.mrb[3].mxu0  ;;  %2833 = vmatprep.mubr.bf16.mxu1 %v3092_v44  ;;  %vm1092_vm11 = vcmp.ge.u32.totalorder %v1028_v42, 429496729  ;;  %v1030_v4 = vxor.u32 %v966_v56, %v902_v54 }
 0x152   : > { %v1719_v55 = vpop.f32.mrb[3].mxu1  ;;  %2834 = vmatmul.mubr.bf16.vlgmr.msra.gmra.mrb[56].mxu1 %v3091_v58  ;;  %vm1093_vm12 = vcmp.ge.u32.totalorder %v1029_v1, 429496729  ;;  %v1031_v10 = vxor.u32 %v967_v6, %v903_v59 }
 0x153   : > { %2882 = vmatpush1.bf16.xpose.msra.mxu1 %v3159_v11  ;;  %vm1126_vm13 = vmpackc.low %vm1093_vm12, %vm1092_vm11  ;;  %vm1094_vm14 = vcmp.ge.u32.totalorder %v1030_v4, 429496729 }
 0x154   : > { %v1158_v21 = vsel %vm1126_vm13, %v254_v34, 0  ;;  %vm1095_vm15 = vcmp.ge.u32.totalorder %v1031_v10, 429496729 }
 0x155   : > { %v3093_v17 = vcombine.low %v1158_v21, %v1158_v21  ;;  %v3094_v57 = vcombine.high %v1158_v21, %v1158_v21  ;;  %vm1127_vm0 = vmpackc.low %vm1095_vm15, %vm1094_vm14 }
 0x156   : > { %v1755_v23 = vpop.f32.mrb[4].mxu0  ;;  %v1159_v25 = vsel %vm1127_vm0, %v255_v5, 0 }
 0x157   : > { %v1756_v16 = vadd.f32 %v1755_v23, %v1716_v19  ;;  %v1795_v13 = vpop.f32.mrb[4].mxu1  ;;  %v1757_v24 = vpop.f32.mrb[5].mxu0  ;;  %2873 = vmatprep.mubr.bf16.mxu0 %v3094_v57  ;;  %v3095_v28 = vcombine.low %v1159_v25, %v1159_v25  ;;  %v3096_v30 = vcombine.high %v1159_v25, %v1159_v25 }
 0x158   : > { %v1797_v26 = vpop.f32.mrb[5].mxu1  ;;  %v1758_v62 = vpop.f32.mrb[6].mxu0  ;;  %2874 = vmatmul.mubr.bf16.vlgmr.msra.gmra.mrb[60].mxu0 %v3093_v17 }
 0x159   : > { %v1796_v0 = vadd.f32 %v1795_v13, %v1756_v16  ;;  %v1798_v35 = vpop.f32.mrb[6].mxu1  ;;  %v1759_v45 = vpop.f32.mrb[7].mxu0  ;;  %2913 = vmatprep.mubr.bf16.mxu1 %v3096_v30 }
 0x15a   : > { %v1799_v27 = vpop.f32.mrb[7].mxu1  ;;  %2914 = vmatmul.mubr.bf16.vlgmr.msra.gmra.mrb[60].mxu1 %v3095_v28 }
 0x16c   : > { %v1835_v39 = vpop.f32.mrb[8].mxu0 }
 0x16d   : > { %v1836_v36 = vadd.f32 %v1835_v39, %v1796_v0  ;;  %v1875_v40 = vpop.f32.mrb[8].mxu1  ;;  %v1837_v8 = vpop.f32.mrb[9].mxu0 }
 0x16e   : > { %v1877_v3 = vpop.f32.mrb[9].mxu1  ;;  %v1838_v43 = vpop.f32.mrb[10].mxu0 }
 0x16f   : > { %v1876_v22 = vadd.f32 %v1875_v40, %v1836_v36  ;;  %v1878_v12 = vpop.f32.mrb[10].mxu1  ;;  %v1839_v14 = vpop.f32.mrb[11].mxu0 }
 0x170   : > { %v1879_v41 = vpop.f32.mrb[11].mxu1 }
 0x174   : > { %v1915_v46 = vpop.f32.mrb[12].mxu0 }
 0x175   : > { %v1916_v20 = vadd.f32 %v1915_v46, %v1876_v22  ;;  %v1955_v47 = vpop.f32.mrb[12].mxu1  ;;  %v1917_v33 = vpop.f32.mrb[13].mxu0 }
 0x176   : > { %v1957_v49 = vpop.f32.mrb[13].mxu1  ;;  %v1918_v9 = vpop.f32.mrb[14].mxu0 }
 0x177   : > { %v1956_v48 = vadd.f32 %v1955_v47, %v1916_v20  ;;  %v1958_v51 = vpop.f32.mrb[14].mxu1  ;;  %v1919_v52 = vpop.f32.mrb[15].mxu0 }
 0x178   : > { %v1959_v60 = vpop.f32.mrb[15].mxu1 }
 0x188   : > { %v1995_v2 = vpop.f32.mrb[16].mxu0 }
 0x189   : > { %v1996_v15 = vadd.f32 %v1995_v2, %v1956_v48  ;;  %v1997_v38 = vpop.f32.mrb[17].mxu0 }
 0x18a   : > { %v1998_v31 = vpop.f32.mrb[18].mxu0 }
 0x18b   : > { %v2035_v54 = vpop.f32.mrb[16].mxu1  ;;  %v1999_v32 = vpop.f32.mrb[19].mxu0 }
 0x18c   : > { %v2036_v53 = vadd.f32 %v2035_v54, %v1996_v15  ;;  %v2037_v11 = vpop.f32.mrb[17].mxu1 }
 0x18d   : > { %v2038_v50 = vpop.f32.mrb[18].mxu1 }
 0x18e   : > { %v2039_v29 = vpop.f32.mrb[19].mxu1 }
 0x190   : > { %v2075_v37 = vpop.f32.mrb[20].mxu0 }
 0x191   : > { %v2076_v58 = vadd.f32 %v2075_v37, %v2036_v53  ;;  %v2077_v44 = vpop.f32.mrb[21].mxu0 }
 0x192   : > { %v2078_v42 = vpop.f32.mrb[22].mxu0 }
 0x193   : > { %v2115_v59 = vpop.f32.mrb[20].mxu1  ;;  %v2079_v61 = vpop.f32.mrb[23].mxu0 }
 0x194   : > { %v2116_v63 = vadd.f32 %v2115_v59, %v2076_v58  ;;  %v2117_v1 = vpop.f32.mrb[21].mxu1 }
 0x195   : > { %v2118_v56 = vpop.f32.mrb[22].mxu1 }
 0x196   : > { %v2119_v19 = vpop.f32.mrb[23].mxu1 }
 0x1a8   : > { %v2155_v7 = vpop.f32.mrb[24].mxu0 }
 0x1a9   : > { %v2156_v18 = vadd.f32 %v2155_v7, %v2116_v63  ;;  %v2195_v34 = vpop.f32.mrb[24].mxu1  ;;  %v2157_v6 = vpop.f32.mrb[25].mxu0 }
 0x1aa   : > { %v2197_v55 = vpop.f32.mrb[25].mxu1  ;;  %v2158_v4 = vpop.f32.mrb[26].mxu0 }
 0x1ab   : > { %v2196_v10 = vadd.f32 %v2195_v34, %v2156_v18  ;;  %v2198_v21 = vpop.f32.mrb[26].mxu1  ;;  %v2159_v5 = vpop.f32.mrb[27].mxu0 }
 0x1ac   : > { %v2199_v17 = vpop.f32.mrb[27].mxu1 }
 0x1b0   : > { %v2235_v57 = vpop.f32.mrb[28].mxu0 }
 0x1b1   : > { %v2236_v23 = vadd.f32 %v2235_v57, %v2196_v10  ;;  %v2237_v16 = vpop.f32.mrb[29].mxu0 }
 0x1b2   : > { %v2275_v13 = vpop.f32.mrb[28].mxu1  ;;  %v2238_v24 = vpop.f32.mrb[30].mxu0 }
 0x1b3   : > { %v2276_v25 = vadd.f32 %v2275_v13, %v2236_v23  ;;  %v2277_v26 = vpop.f32.mrb[29].mxu1  ;;  %v2239_v62 = vpop.f32.mrb[31].mxu0 }
 0x1b4   : > { %v2278_v28 = vpop.f32.mrb[30].mxu1 }
 0x1b5   : > { %v2279_v30 = vpop.f32.mrb[31].mxu1 }
 0x1c6   : > { %v2315_v0 = vpop.f32.mrb[32].mxu0 }
 0x1c7   : > { %v2316_v35 = vadd.f32 %v2315_v0, %v2276_v25  ;;  %v2355_v45 = vpop.f32.mrb[32].mxu1  ;;  %v2317_v27 = vpop.f32.mrb[33].mxu0 }
 0x1c8   : > { %v2357_v39 = vpop.f32.mrb[33].mxu1  ;;  %v2318_v36 = vpop.f32.mrb[34].mxu0 }
 0x1c9   : > { %v2356_v40 = vadd.f32 %v2355_v45, %v2316_v35  ;;  %v2358_v8 = vpop.f32.mrb[34].mxu1  ;;  %v2319_v3 = vpop.f32.mrb[35].mxu0 }
 0x1ca   : > { %v2359_v43 = vpop.f32.mrb[35].mxu1 }
 0x1cf   : > { %v2395_v22 = vpop.f32.mrb[36].mxu0 }
 0x1d0   : > { %v2396_v12 = vadd.f32 %v2395_v22, %v2356_v40  ;;  %v2397_v14 = vpop.f32.mrb[37].mxu0  ;;  %v1160_v22 = vld [vmem:[#allocation9] sm:$0xff] }
 0x1d1   : > { %v2435_v41 = vpop.f32.mrb[36].mxu1  ;;  %v2398_v46 = vpop.f32.mrb[38].mxu0 }
 0x1d2   : > { %v2436_v20 = vadd.f32 %v2435_v41, %v2396_v12  ;;  %v2437_v47 = vpop.f32.mrb[37].mxu1  ;;  %v2399_v33 = vpop.f32.mrb[39].mxu0 }
 0x1d3   : > { %v2438_v49 = vpop.f32.mrb[38].mxu1 }
 0x1d4   : > { %v2439_v9 = vpop.f32.mrb[39].mxu1 }
 0x1d5   : > { %v3162_v9 = vld [vmem:[%s4229_s3] ss:$0 sm:$0xff] (!%p3161_p8) }
 0x1e5   : > { %v2475_v48 = vpop.f32.mrb[40].mxu0 }
 0x1e6   : > { %v2476_v51 = vadd.f32 %v2475_v48, %v2436_v20  ;;  %v2515_v52 = vpop.f32.mrb[40].mxu1  ;;  %v2477_v60 = vpop.f32.mrb[41].mxu0 }
 0x1e7   : > { %v2517_v2 = vpop.f32.mrb[41].mxu1  ;;  %v2478_v15 = vpop.f32.mrb[42].mxu0 }
 0x1e8   : > { %v2516_v38 = vadd.f32 %v2515_v52, %v2476_v51  ;;  %v2518_v31 = vpop.f32.mrb[42].mxu1  ;;  %v2479_v54 = vpop.f32.mrb[43].mxu0 }
 0x1e9   : > { %v2519_v32 = vpop.f32.mrb[43].mxu1 }
 0x1ef   : > { %v2555_v53 = vpop.f32.mrb[44].mxu0 }
 0x1f0   : > { %v2556_v11 = vadd.f32 %v2555_v53, %v2516_v38  ;;  %v2595_v50 = vpop.f32.mrb[44].mxu1  ;;  %v2557_v29 = vpop.f32.mrb[45].mxu0 }
 0x1f1   : > { %v2597_v37 = vpop.f32.mrb[45].mxu1  ;;  %v2558_v58 = vpop.f32.mrb[46].mxu0 }
 0x1f2   : > { %v2596_v44 = vadd.f32 %v2595_v50, %v2556_v11  ;;  %v2598_v42 = vpop.f32.mrb[46].mxu1  ;;  %v2559_v59 = vpop.f32.mrb[47].mxu0 }
 0x1f3   : > { %v2599_v61 = vpop.f32.mrb[47].mxu1 }
 0x204   : > { %v2635_v63 = vpop.f32.mrb[48].mxu0 }
 0x205   : > { %v2636_v1 = vadd.f32 %v2635_v63, %v2596_v44  ;;  %v2637_v56 = vpop.f32.mrb[49].mxu0 }
 0x206   : > { %v2675_v19 = vpop.f32.mrb[48].mxu1  ;;  %v2638_v7 = vpop.f32.mrb[50].mxu0 }
 0x207   : > { %v2676_v18 = vadd.f32 %v2675_v19, %v2636_v1  ;;  %v2677_v34 = vpop.f32.mrb[49].mxu1  ;;  %v2639_v6 = vpop.f32.mrb[51].mxu0 }
 0x208   : > { %v2678_v55 = vpop.f32.mrb[50].mxu1 }
 0x209   : > { %v2679_v4 = vpop.f32.mrb[51].mxu1 }
 0x20d   : > { %v2715_v10 = vpop.f32.mrb[52].mxu0 }
 0x20e   : > { %v2716_v21 = vadd.f32 %v2715_v10, %v2676_v18  ;;  %v2755_v5 = vpop.f32.mrb[52].mxu1  ;;  %v2717_v17 = vpop.f32.mrb[53].mxu0 }
 0x20f   : > { %v2757_v57 = vpop.f32.mrb[53].mxu1  ;;  %v2718_v23 = vpop.f32.mrb[54].mxu0 }
 0x210   : > { %v2756_v16 = vadd.f32 %v2755_v5, %v2716_v21  ;;  %v2758_v13 = vpop.f32.mrb[54].mxu1  ;;  %v2719_v24 = vpop.f32.mrb[55].mxu0 }
 0x211   : > { %v2759_v25 = vpop.f32.mrb[55].mxu1 }
 0x223   : > { %v2795_v26 = vpop.f32.mrb[56].mxu0 }
 0x224   : > { %v2796_v62 = vadd.f32 %v2795_v26, %v2756_v16  ;;  %v2797_v28 = vpop.f32.mrb[57].mxu0 }
 0x225   : > { %v2798_v30 = vpop.f32.mrb[58].mxu0  ;;  %v2835_v0 = vpop.f32.mrb[56].mxu1 }
 0x226   : > { %v2799_v35 = vpop.f32.mrb[59].mxu0  ;;  %v2836_v45 = vadd.f32 %v2835_v0, %v2796_v62  ;;  %v2837_v27 = vpop.f32.mrb[57].mxu1 }
 0x227   : > { %v2838_v39 = vpop.f32.mrb[58].mxu1 }
 0x228   : > { %v2839_v36 = vpop.f32.mrb[59].mxu1 }
 0x22b   : > { %v2875_v40 = vpop.f32.mrb[60].mxu0 }
 0x22c   : > { %v2876_v8 = vadd.f32 %v2875_v40, %v2836_v45  ;;  %v2877_v3 = vpop.f32.mrb[61].mxu0  ;;  %2927 = sbr.rel (%p3161_p8) target bundleno = 575 (0x23f), region = 48 }
 0x22d   : > { %v2878_v43 = vpop.f32.mrb[62].mxu0  ;;  %v2915_v12 = vpop.f32.mrb[60].mxu1 }
 0x22e   : > { %v2879_v14 = vpop.f32.mrb[63].mxu0  ;;  %v2916_v41 = vadd.f32 %v2915_v12, %v2876_v8  ;;  %v2917_v46 = vpop.f32.mrb[61].mxu1 }
 0x22f   : > { %v2918_v20 = vpop.f32.mrb[62].mxu1 }
 0x230   : > { %v2921_v47 = vadd.f32 %v2916_v41, %v1160_v22  ;;  %v2919_v33 = vpop.f32.mrb[63].mxu1 }
 0x232   : > { %2923 = vst.msk [vmem:[#allocation9] sm:$0xff] %vm2922_vm1, %v2921_v47 }
 0x239   : > { %v2928_v49 = vld [vmem:[#allocation9] sm:$0xff] }
 0x23a   : > { %v2929_v48 = vmul.f32 1.1111112, %v2928_v49 }
 0x23c   : > { %v2937_v51 = vadd.f32 %v3162_v9, %v2929_v48 }
 0x23e   : > { %2938 = vst.msk [vmem:[#allocation9] sm:$0xff] %vm2922_vm1, %v2937_v51 }
 0x23f PF: > { %p3185_p5 = scmp.eq.s32.totalorder %s3466_s0, 3  ;;  %s3418_s12 = smov [#allocation9]  }
 0x240   : > { %s2946_s5 = sshll.u32 %s3418_s12, 4  ;;  %s2947_s5 = int_to_ptr.vmem [resolvable:$true] %s2946_s5 }
 0x241   : > { %s3345_s7 = scalar_lea.vmem %s2947_s5, 128  ;;  %p3352_p0 = scmp.lt.s32.totalorder %s2947_s5, %s2947_s5 }
 0x242   : > { %p3346_p1 = scmp.ne.s32.totalorder %s2947_s5, %s3345_s7  ;;  %p3353_p4 = scmp.lt.s32.totalorder %s3345_s7, %s3345_s7 }
 0x244   : > { %p3347_p2 = pnand %p3346_p1, %p3185_p5  ;;  %p3354_p9 = por %p3353_p4, %p3352_p0 }
 0x246   : > { %p3348_p3 = pneg %p3347_p2 }
 0x248   : > { %p3355_p10 = pnand %p3354_p9, %p3348_p3 }
 0x24a   : > { %3358 = shalt.err (!%p3355_p10)
}
 0x24b   : > { %s3359_s28 = scalar_lea.hbm %s4230_s4, 128 }
 0x24c   : > { %p3360_p11 = scmp.ne.s32.totalorder %s4230_s4, %s3359_s28  ;;  %p3365_p12 = scmp.lt.u32.totalorder %s3359_s28, %s4230_s4 }
 0x24e   : > { %p3361_p13 = pnand %p3360_p11, %p3185_p5 }
 0x250   : > { %p3362_p6 = pneg %p3361_p13 }
 0x252   : > { %p3367_p7 = pnand %p3365_p12, %p3362_p6 }
 0x254   : > { %3370 = shalt.err (!%p3367_p7)
}
 0x255   : > { %3174 = dma.vmem_to_hbm [thread:$0]  (%p3185_p5), %s2947_s5, 128, %s4230_s4, [#allocation6]  }
 0x256   : > { %3396 = dma.done.wait (%p3185_p5), [#allocation6], 128  }
 0x257   : > { %3398 = vsyncadd (%p3185_p5), [#allocation6], 4294967168 }
 0x258 PF: > { %p19_p8 = scmp.ge.s32.totalorder %s3469_s21, 6   ;;  %s4239_s17 = smov %s3405_s18 }
 0x259   : > { %s4240_s18 = smov %s3409_s19  ;;  %s4241_s19 = smov %s3479_s24 }
 0x25a   : > { %s4242_s20 = smov %s3469_s21  ;;  %21 = sbr.rel (!%p19_p8) target bundleno = 8 (0x8), region = 90 }
 0x261   :  { %2959 = vsyncpa [#allocation5], 1 }
 0x262   :  { %2961 = vsyncpa [#allocation5 + $0x1], 1 }
 0x263   :  { %2962 = vsyncpa [#allocation8], 1 }
 0x264   :  { %2964 = vsyncpa [#allocation8 + $0x1], 1 }
 0x265   :  { %2965 = vsyncpa [#allocation6], 1 }
 0x266   :  { %2967 = vsyncpa [#allocation6 + $0x1], 1 }

</bundles_post_ra>
